<compile_context>
chip_gen: v6e
topology: v6e:2x2x1
jax: 0.10.0
libtpu: 0.0.40
codegen_flags: <defaults>
</compile_context>

<pallas_src>
import math

import jax
import jax.numpy as jnp
from jax.experimental import pallas as pl
from jax.experimental.pallas import tpu as pltpu

_MiB = 1024 * 1024


def _attn_pool_kernel(x_ref, pos0_ref, posr_ref,
                      wq_ref, bq_ref,
                      wk_ref, bk_ref,
                      wv_ref, bv_ref,
                      wc_ref, bc_ref,
                      m_ref, mt_ref, out_ref):
    # Block shapes:
    #   x_ref    : (B, HW, C)   bf16  B = batch tile
    #   pos0_ref : (1, C)       f32   positional embedding of the mean token
    #   posr_ref : (HW, C)      bf16  positional embedding of the grid tokens
    #   wq_ref   : (C, C)       bf16  q_proj.weight.T * (1/sqrt(head_dim))
    #   bq_ref   : (1, C)       f32   q_proj.bias * (1/sqrt(head_dim))
    #   wk_ref   : (C, C)       bf16  k_proj.weight.T        bk_ref : (1, C) f32
    #   wv_ref   : (C, C)       bf16  v_proj.weight.T        bv_ref : (1, C) f32
    #   wc_ref   : (C, Cout)    bf16  c_proj.weight.T        bc_ref : (1, Cout) f32
    #   m_ref    : (C, H)       bf16  head one-hot (channel -> head)
    #   mt_ref   : (H, C)       bf16  its transpose (head -> channel broadcast)
    #   out_ref  : (B, Cout)    f32
    x = x_ref[...]                                       # (B, HW, C) bf16
    b, hw, c = x.shape
    nh = m_ref.shape[1]

    wq = wq_ref[...]
    wk = wk_ref[...]
    wv = wv_ref[...]
    m = m_ref[...]
    mt = mt_ref[...]

    # Mean token (f32 accumulation) + positional embeddings.  The mean token
    # is handled separately so the big tensor stays (8,128)-aligned (no ragged
    # HW+1 concat).
    tok0 = jnp.mean(x.astype(jnp.float32), axis=1) + pos0_ref[...]         # (B, C) f32
    tok0_bf = tok0.astype(jnp.bfloat16)                                    # (B, C)
    rest2d = (x + posr_ref[...][None, :, :]).reshape(b * hw, c)            # (B*HW, C) bf16

    # Projections: bf16 operands, f32 accumulation.  The q scale is folded
    # into wq/bq on the host.  The dominant K/V projections are single 2-D
    # matmuls with M = B*HW rows (batch + sequence collapsed).
    q = jnp.dot(tok0_bf, wq, preferred_element_type=jnp.float32) + bq_ref[...]   # (B, C)
    k0 = jnp.dot(tok0_bf, wk, preferred_element_type=jnp.float32) + bk_ref[...]  # (B, C)
    v0 = jnp.dot(tok0_bf, wv, preferred_element_type=jnp.float32) + bv_ref[...]  # (B, C)
    kr2d = jnp.dot(rest2d, wk, preferred_element_type=jnp.float32) + bk_ref[...]  # (B*HW, C)
    vr2d = jnp.dot(rest2d, wv, preferred_element_type=jnp.float32) + bv_ref[...]  # (B*HW, C)

    # Single-query attention, all heads at once: per-head score = sum over
    # that head's channels of q * k, via the (C, H) one-hot (exact in bf16).
    s0 = jnp.dot((k0 * q).astype(jnp.bfloat16), m,
                 preferred_element_type=jnp.float32)                        # (B, H)
    kq2d = (kr2d.reshape(b, hw, c) * q[:, None, :]).reshape(b * hw, c)
    sr = jnp.dot(kq2d.astype(jnp.bfloat16), m,
                 preferred_element_type=jnp.float32).reshape(b, hw, nh)     # (B, HW, H)

    # Numerically-stable softmax (f32) over the HW+1 key positions.
    s_max = jnp.maximum(jnp.max(sr, axis=1), s0)                            # (B, H)
    p0 = jnp.exp(s0 - s_max)                                                # (B, H)
    pr = jnp.exp(sr - s_max[:, None, :])                                    # (B, HW, H)
    inv = 1.0 / (p0 + jnp.sum(pr, axis=1))                                  # (B, H) exact

    # Weighted value sum: broadcast per-head probabilities back to channels
    # with the transposed one-hot, multiply with V, reduce over positions.
    p0_c = jnp.dot((p0 * inv).astype(jnp.bfloat16), mt,
                   preferred_element_type=jnp.float32)                      # (B, C)
    wr2d = jnp.dot((pr * inv[:, None, :]).reshape(b * hw, nh).astype(jnp.bfloat16),
                   mt, preferred_element_type=jnp.float32)                  # (B*HW, C)
    attn = p0_c * v0 + jnp.sum((wr2d * vr2d).reshape(b, hw, c), axis=1)     # (B, C)

    # Output projection.
    out = jnp.dot(attn.astype(jnp.bfloat16), wc_ref[...],
                  preferred_element_type=jnp.float32) + bc_ref[...]         # (B, Cout)
    out_ref[...] = out.astype(out_ref.dtype)


def _vmem_capacity_bytes():
    try:
        return int(pltpu.get_tpu_info().vmem_capacity_bytes)
    except Exception:
        return 128 * _MiB  # conservative default (v5e/v6e)


def _pick_batch_tile(n, vmem_cap):
    # v7x: 64 MiB/TC -> keep the per-step footprint small (tile of 8).
    # v5e/v6e: 128 MiB -> larger tiles amortize per-step overhead and improve
    # MXU row occupancy.
    tile = 8 if vmem_cap <= 64 * _MiB else 32
    # Prefer >= 2 grid steps when the batch allows (megacore sharding on v7x,
    # pipelining elsewhere); keep the tile a multiple of 8.
    while tile > 8 and -(-n // tile) < 2:
        tile //= 2
    return max(tile, 8)


def prepare_attention_pool_params(params, num_heads):
    """One-time host-side weight prep: transpose, fold the q scale, bf16 cast,
    build the head one-hots.  Do this at model init, not per call."""
    c = params["wq"].shape[0]
    c_out = params["wc"].shape[0]
    assert c % num_heads == 0, "embed_dim must be divisible by num_heads"
    head_dim = c // num_heads
    scale = 1.0 / math.sqrt(head_dim)
    # Head-assignment one-hot: m[ch, h] = 1 iff channel ch belongs to head h
    # (exact in bf16).
    m = (jnp.arange(c)[:, None] // head_dim
         == jnp.arange(num_heads)[None, :]).astype(jnp.bfloat16)
    return {
        "num_heads": num_heads,
        "pos0": params["pos"][0:1].astype(jnp.float32),          # (1, C)
        "posr": params["pos"][1:].astype(jnp.bfloat16),          # (HW, C)
        "wq": (params["wq"].T * scale).astype(jnp.bfloat16),     # (C, C)
        "bq": (params["bq"] * scale).reshape(1, c).astype(jnp.float32),
        "wk": params["wk"].T.astype(jnp.bfloat16),                # (C, C)
        "bk": params["bk"].reshape(1, c).astype(jnp.float32),
        "wv": params["wv"].T.astype(jnp.bfloat16),                # (C, C)
        "bv": params["bv"].reshape(1, c).astype(jnp.float32),
        "wc": params["wc"].T.astype(jnp.bfloat16),                # (C, Cout)
        "bc": params["bc"].reshape(1, c_out).astype(jnp.float32),
        "m": m,                                                   # (C, H)
        "mT": m.T,                                                # (H, C)
    }


def attention_pool_2d_seq(x_seq, prepped):
    """x_seq: (N, HW, C) float -> (N, output_dim) float32.
    Use this entry point when the producer can emit channels-last directly."""
    n, hw, c = x_seq.shape
    c_out = prepped["wc"].shape[1]
    nh = prepped["m"].shape[1]

    vmem_cap = _vmem_capacity_bytes()
    b_tile = _pick_batch_tile(n, vmem_cap)
    n_pad = -(-n // b_tile) * b_tile
    # Leave headroom for Mosaic internal scratch: ~48 MiB on v7x, ~110 MiB on
    # the 128 MiB generations.
    vmem_limit = max(32 * _MiB, min(vmem_cap - 16 * _MiB, 110 * _MiB))

    # Ship x in bf16 (halves the per-step input double-buffer and DMA bytes;
    # the matmuls consume bf16 anyway, mean-token accumulation stays f32).
    x_seq = x_seq.astype(jnp.bfloat16)
    if n_pad != n:
        x_seq = jnp.pad(x_seq, ((0, n_pad - n), (0, 0), (0, 0)))

    inv_map = lambda i: (0, 0)          # grid-invariant blocks: DMA'd once
    single = pl.Buffered(1)             # ...and single-buffered (no double-buffer)

    out = pl.pallas_call(
        _attn_pool_kernel,
        grid=(n_pad // b_tile,),
        in_specs=[
            pl.BlockSpec((b_tile, hw, c), lambda i: (i, 0, 0)),            # x (batch tile)
            pl.BlockSpec((1, c), inv_map, pipeline_mode=single),           # pos0
            pl.BlockSpec((hw, c), inv_map, pipeline_mode=single),          # pos_rest
            pl.BlockSpec((c, c), inv_map, pipeline_mode=single),           # wq^T (scaled)
            pl.BlockSpec((1, c), inv_map, pipeline_mode=single),           # bq (scaled)
            pl.BlockSpec((c, c), inv_map, pipeline_mode=single),           # wk^T
            pl.BlockSpec((1, c), inv_map, pipeline_mode=single),           # bk
            pl.BlockSpec((c, c), inv_map, pipeline_mode=single),           # wv^T
            pl.BlockSpec((1, c), inv_map, pipeline_mode=single),           # bv
            pl.BlockSpec((c, c_out), inv_map, pipeline_mode=single),       # wc^T
            pl.BlockSpec((1, c_out), inv_map, pipeline_mode=single),       # bc
            pl.BlockSpec((c, nh), inv_map, pipeline_mode=single),          # head one-hot
            pl.BlockSpec((nh, c), inv_map, pipeline_mode=single),          # one-hot^T
        ],
        out_specs=pl.BlockSpec((b_tile, c_out), lambda i: (i, 0)),
        out_shape=jax.ShapeDtypeStruct((n_pad, c_out), jnp.float32),
        compiler_params=pltpu.CompilerParams(
            dimension_semantics=("parallel",),   # shard batch steps across TCs (v7x)
            vmem_limit_bytes=vmem_limit),
    )(x_seq, prepped["pos0"], prepped["posr"],
      prepped["wq"], prepped["bq"], prepped["wk"], prepped["bk"],
      prepped["wv"], prepped["bv"], prepped["wc"], prepped["bc"],
      prepped["m"], prepped["mT"])
    return out[:n]


def attention_pool_2d(x_nchw, prepped):
    """x_nchw: (N, C, H, W) float -> (N, output_dim) float32."""
    n, c, h, w = x_nchw.shape
    # Layout glue to match the PyTorch NCHW contract.  Producers that can emit
    # channels-last should call attention_pool_2d_seq() directly and skip this
    # extra HBM read+write.
    x_seq = jnp.transpose(x_nchw.reshape(n, c, h * w), (0, 2, 1))
    return attention_pool_2d_seq(x_seq, prepped)


def reference_attention_pool_2d(x_nchw, params, num_heads):
    """Pure-JAX f32 reference mirroring F.multi_head_attention_forward."""
    n, c, h, w = x_nchw.shape
    hd = c // num_heads
    x = jnp.transpose(x_nchw.reshape(n, c, h * w), (2, 0, 1))         # (HW, N, C)
    x = jnp.concatenate([x.mean(axis=0, keepdims=True), x], axis=0)   # (L, N, C)
    x = x + params["pos"][:, None, :]
    q = x[:1] @ params["wq"].T + params["bq"]                         # (1, N, C)
    k = x @ params["wk"].T + params["bk"]                             # (L, N, C)
    v = x @ params["wv"].T + params["bv"]                             # (L, N, C)
    q = q[0].reshape(n, num_heads, hd) / math.sqrt(hd)                # (N, H, hd)
    k = k.reshape(-1, n, num_heads, hd)
    v = v.reshape(-1, n, num_heads, hd)
    s = jnp.einsum("nhd,lnhd->nhl", q, k)
    p = jax.nn.softmax(s, axis=-1)
    o = jnp.einsum("nhl,lnhd->nhd", p, v).reshape(n, c)               # (N, C)
    return o @ params["wc"].T + params["bc"]


def make_params(key, spacial_dim, embed_dim, output_dim):
    keys = jax.random.split(key, 9)
    seq_len = spacial_dim ** 2 + 1
    return {
        "pos": jax.random.normal(keys[0], (seq_len, embed_dim), jnp.float32)
               / embed_dim ** 0.5,
        "wq": jax.random.normal(keys[1], (embed_dim, embed_dim), jnp.float32) * 0.05,
        "bq": jax.random.normal(keys[2], (embed_dim,), jnp.float32) * 0.05,
        "wk": jax.random.normal(keys[3], (embed_dim, embed_dim), jnp.float32) * 0.05,
        "bk": jax.random.normal(keys[4], (embed_dim,), jnp.float32) * 0.05,
        "wv": jax.random.normal(keys[5], (embed_dim, embed_dim), jnp.float32) * 0.05,
        "bv": jax.random.normal(keys[6], (embed_dim,), jnp.float32) * 0.05,
        "wc": jax.random.normal(keys[7], (output_dim, embed_dim), jnp.float32) * 0.05,
        "bc": jax.random.normal(keys[8], (output_dim,), jnp.float32) * 0.05,
    }


if __name__ == "__main__":
    # small shapes: batch=2, embed_dim=32, spatial 4x4, 4 heads, output_dim=32
    batch, embed_dim, spacial_dim, num_heads, output_dim = 2, 32, 4, 4, 32

    key = jax.random.PRNGKey(0)
    k_x, k_p = jax.random.split(key)
    x = jax.random.normal(k_x, (batch, embed_dim, spacial_dim, spacial_dim),
                          jnp.float32)
    params = make_params(k_p, spacial_dim, embed_dim, output_dim)

    # One-time weight prep (hoisted out of the per-call path).
    prepped = prepare_attention_pool_params(params, num_heads)
    prepped = jax.tree_util.tree_map(
        lambda v: jax.block_until_ready(v) if isinstance(v, jax.Array) else v,
        prepped)

    out = attention_pool_2d(x, prepped)
    out = jax.block_until_ready(out)

    ref = reference_attention_pool_2d(x, params, num_heads)
    assert out.shape == (batch, output_dim)
    # bf16 matmul operands -> relaxed tolerance vs the f32 reference.
    assert jnp.allclose(out, ref, atol=3e-2, rtol=3e-2), "mismatch vs reference"

    print("KERNEL_OK")
</pallas_src>

<mosaic_0001>
module attributes {stable_mosaic.version = 11 : i64} {
  func.func @_attn_pool_kernel(%arg0: i32, %arg1: memref<8x16x32xbf16, #tpu.memory_space<vmem>>, %arg2: memref<1x32xf32, #tpu.memory_space<vmem>>, %arg3: memref<16x32xbf16, #tpu.memory_space<vmem>>, %arg4: memref<32x32xbf16, #tpu.memory_space<vmem>>, %arg5: memref<1x32xf32, #tpu.memory_space<vmem>>, %arg6: memref<32x32xbf16, #tpu.memory_space<vmem>>, %arg7: memref<1x32xf32, #tpu.memory_space<vmem>>, %arg8: memref<32x32xbf16, #tpu.memory_space<vmem>>, %arg9: memref<1x32xf32, #tpu.memory_space<vmem>>, %arg10: memref<32x32xbf16, #tpu.memory_space<vmem>>, %arg11: memref<1x32xf32, #tpu.memory_space<vmem>>, %arg12: memref<32x4xbf16, #tpu.memory_space<vmem>>, %arg13: memref<4x32xbf16, #tpu.memory_space<vmem>>, %arg14: memref<8x32xf32, #tpu.memory_space<vmem>>) attributes {dimension_semantics = [#tpu.dimension_semantics<parallel>], iteration_bounds = array<i64: 1>, scalar_prefetch = 0 : i64, scratch_operands = 0 : i64, tpu.core_type = #tpu.core_type<tc>, window_params = [{transform_indices = @transform_0, window_bounds = array<i64: 8, 16, 32>}, {pipeline_mode = #tpu.pipeline_mode<synchronous>, transform_indices = @transform_1, window_bounds = array<i64: 1, 32>}, {pipeline_mode = #tpu.pipeline_mode<synchronous>, transform_indices = @transform_2, window_bounds = array<i64: 16, 32>}, {pipeline_mode = #tpu.pipeline_mode<synchronous>, transform_indices = @transform_3, window_bounds = array<i64: 32, 32>}, {pipeline_mode = #tpu.pipeline_mode<synchronous>, transform_indices = @transform_4, window_bounds = array<i64: 1, 32>}, {pipeline_mode = #tpu.pipeline_mode<synchronous>, transform_indices = @transform_5, window_bounds = array<i64: 32, 32>}, {pipeline_mode = #tpu.pipeline_mode<synchronous>, transform_indices = @transform_6, window_bounds = array<i64: 1, 32>}, {pipeline_mode = #tpu.pipeline_mode<synchronous>, transform_indices = @transform_7, window_bounds = array<i64: 32, 32>}, {pipeline_mode = #tpu.pipeline_mode<synchronous>, transform_indices = @transform_8, window_bounds = array<i64: 1, 32>}, {pipeline_mode = #tpu.pipeline_mode<synchronous>, transform_indices = @transform_9, window_bounds = array<i64: 32, 32>}, {pipeline_mode = #tpu.pipeline_mode<synchronous>, transform_indices = @transform_10, window_bounds = array<i64: 1, 32>}, {pipeline_mode = #tpu.pipeline_mode<synchronous>, transform_indices = @transform_11, window_bounds = array<i64: 32, 4>}, {pipeline_mode = #tpu.pipeline_mode<synchronous>, transform_indices = @transform_12, window_bounds = array<i64: 4, 32>}, {transform_indices = @transform_13, window_bounds = array<i64: 8, 32>}]} {
    %c0 = arith.constant 0 : index
    %c0_0 = arith.constant 0 : index
    %c0_1 = arith.constant 0 : index
    %0 = vector.load %arg1[%c0, %c0_0, %c0_1] : memref<8x16x32xbf16, #tpu.memory_space<vmem>>, vector<8x16x32xbf16>
    %c0_2 = arith.constant 0 : index
    %c0_3 = arith.constant 0 : index
    %1 = vector.load %arg4[%c0_2, %c0_3] : memref<32x32xbf16, #tpu.memory_space<vmem>>, vector<32x32xbf16>
    %c0_4 = arith.constant 0 : index
    %c0_5 = arith.constant 0 : index
    %2 = vector.load %arg6[%c0_4, %c0_5] : memref<32x32xbf16, #tpu.memory_space<vmem>>, vector<32x32xbf16>
    %c0_6 = arith.constant 0 : index
    %c0_7 = arith.constant 0 : index
    %3 = vector.load %arg8[%c0_6, %c0_7] : memref<32x32xbf16, #tpu.memory_space<vmem>>, vector<32x32xbf16>
    %c0_8 = arith.constant 0 : index
    %c0_9 = arith.constant 0 : index
    %4 = vector.load %arg12[%c0_8, %c0_9] : memref<32x4xbf16, #tpu.memory_space<vmem>>, vector<32x4xbf16>
    %c0_10 = arith.constant 0 : index
    %c0_11 = arith.constant 0 : index
    %5 = vector.load %arg13[%c0_10, %c0_11] : memref<4x32xbf16, #tpu.memory_space<vmem>>, vector<4x32xbf16>
    %6 = arith.extf %0 : vector<8x16x32xbf16> to vector<8x16x32xf32>
    %cst = arith.constant dense<0.000000e+00> : vector<8x32xf32>
    %7 = vector.multi_reduction <add>, %6, %cst [1] : vector<8x16x32xf32> to vector<8x32xf32>
    %cst_12 = arith.constant 1.600000e+01 : f32
    %8 = vector.broadcast %cst_12 : f32 to vector<8x32xf32>
    %9 = arith.divf %7, %8 : vector<8x32xf32>
    %c0_13 = arith.constant 0 : index
    %c0_14 = arith.constant 0 : index
    %10 = vector.load %arg2[%c0_13, %c0_14] : memref<1x32xf32, #tpu.memory_space<vmem>>, vector<1x32xf32>
    %11 = vector.broadcast %10 : vector<1x32xf32> to vector<8x32xf32>
    %12 = arith.addf %9, %11 : vector<8x32xf32>
    %13 = arith.truncf %12 : vector<8x32xf32> to vector<8x32xbf16>
    %c0_15 = arith.constant 0 : index
    %c0_16 = arith.constant 0 : index
    %14 = vector.load %arg3[%c0_15, %c0_16] : memref<16x32xbf16, #tpu.memory_space<vmem>>, vector<16x32xbf16>
    %15 = vector.shape_cast %14 : vector<16x32xbf16> to vector<1x16x32xbf16>
    %16 = vector.broadcast %15 : vector<1x16x32xbf16> to vector<8x16x32xbf16>
    %17 = arith.addf %0, %16 : vector<8x16x32xbf16>
    %18 = vector.shape_cast %17 : vector<8x16x32xbf16> to vector<128x32xbf16>
    %cst_17 = arith.constant dense<0.000000e+00> : vector<8x32xf32>
    %19 = tpu.matmul %13, %1, %cst_17 {dimension_numbers = #tpu.dot_dimension_numbers<[1], [0], [0], [1], [0, 0, 1, 1], [], []>} : vector<8x32xbf16>, vector<32x32xbf16>, vector<8x32xf32> -> vector<8x32xf32>
    %c0_18 = arith.constant 0 : index
    %c0_19 = arith.constant 0 : index
    %20 = vector.load %arg5[%c0_18, %c0_19] : memref<1x32xf32, #tpu.memory_space<vmem>>, vector<1x32xf32>
    %21 = vector.broadcast %20 : vector<1x32xf32> to vector<8x32xf32>
    %22 = arith.addf %19, %21 : vector<8x32xf32>
    %cst_20 = arith.constant dense<0.000000e+00> : vector<8x32xf32>
    %23 = tpu.matmul %13, %2, %cst_20 {dimension_numbers = #tpu.dot_dimension_numbers<[1], [0], [0], [1], [0, 0, 1, 1], [], []>} : vector<8x32xbf16>, vector<32x32xbf16>, vector<8x32xf32> -> vector<8x32xf32>
    %c0_21 = arith.constant 0 : index
    %c0_22 = arith.constant 0 : index
    %24 = vector.load %arg7[%c0_21, %c0_22] : memref<1x32xf32, #tpu.memory_space<vmem>>, vector<1x32xf32>
    %25 = vector.broadcast %24 : vector<1x32xf32> to vector<8x32xf32>
    %26 = arith.addf %23, %25 : vector<8x32xf32>
    %cst_23 = arith.constant dense<0.000000e+00> : vector<8x32xf32>
    %27 = tpu.matmul %13, %3, %cst_23 {dimension_numbers = #tpu.dot_dimension_numbers<[1], [0], [0], [1], [0, 0, 1, 1], [], []>} : vector<8x32xbf16>, vector<32x32xbf16>, vector<8x32xf32> -> vector<8x32xf32>
    %c0_24 = arith.constant 0 : index
    %c0_25 = arith.constant 0 : index
    %28 = vector.load %arg9[%c0_24, %c0_25] : memref<1x32xf32, #tpu.memory_space<vmem>>, vector<1x32xf32>
    %29 = vector.broadcast %28 : vector<1x32xf32> to vector<8x32xf32>
    %30 = arith.addf %27, %29 : vector<8x32xf32>
    %cst_26 = arith.constant dense<0.000000e+00> : vector<128x32xf32>
    %31 = tpu.matmul %18, %2, %cst_26 {dimension_numbers = #tpu.dot_dimension_numbers<[1], [0], [0], [1], [0, 0, 1, 1], [], []>} : vector<128x32xbf16>, vector<32x32xbf16>, vector<128x32xf32> -> vector<128x32xf32>
    %c0_27 = arith.constant 0 : index
    %c0_28 = arith.constant 0 : index
    %32 = vector.load %arg7[%c0_27, %c0_28] : memref<1x32xf32, #tpu.memory_space<vmem>>, vector<1x32xf32>
    %33 = vector.broadcast %32 : vector<1x32xf32> to vector<128x32xf32>
    %34 = arith.addf %31, %33 : vector<128x32xf32>
    %cst_29 = arith.constant dense<0.000000e+00> : vector<128x32xf32>
    %35 = tpu.matmul %18, %3, %cst_29 {dimension_numbers = #tpu.dot_dimension_numbers<[1], [0], [0], [1], [0, 0, 1, 1], [], []>} : vector<128x32xbf16>, vector<32x32xbf16>, vector<128x32xf32> -> vector<128x32xf32>
    %c0_30 = arith.constant 0 : index
    %c0_31 = arith.constant 0 : index
    %36 = vector.load %arg9[%c0_30, %c0_31] : memref<1x32xf32, #tpu.memory_space<vmem>>, vector<1x32xf32>
    %37 = vector.broadcast %36 : vector<1x32xf32> to vector<128x32xf32>
    %38 = arith.addf %35, %37 : vector<128x32xf32>
    %39 = arith.mulf %26, %22 : vector<8x32xf32>
    %40 = arith.truncf %39 : vector<8x32xf32> to vector<8x32xbf16>
    %cst_32 = arith.constant dense<0.000000e+00> : vector<8x4xf32>
    %41 = tpu.matmul %40, %4, %cst_32 {dimension_numbers = #tpu.dot_dimension_numbers<[1], [0], [0], [1], [0, 0, 1, 1], [], []>} : vector<8x32xbf16>, vector<32x4xbf16>, vector<8x4xf32> -> vector<8x4xf32>
    %42 = vector.shape_cast %34 : vector<128x32xf32> to vector<8x16x32xf32>
    %43 = vector.shape_cast %22 : vector<8x32xf32> to vector<8x1x32xf32>
    %44 = vector.broadcast %43 : vector<8x1x32xf32> to vector<8x16x32xf32>
    %45 = arith.mulf %42, %44 : vector<8x16x32xf32>
    %46 = vector.shape_cast %45 : vector<8x16x32xf32> to vector<128x32xf32>
    %47 = arith.truncf %46 : vector<128x32xf32> to vector<128x32xbf16>
    %cst_33 = arith.constant dense<0.000000e+00> : vector<128x4xf32>
    %48 = tpu.matmul %47, %4, %cst_33 {dimension_numbers = #tpu.dot_dimension_numbers<[1], [0], [0], [1], [0, 0, 1, 1], [], []>} : vector<128x32xbf16>, vector<32x4xbf16>, vector<128x4xf32> -> vector<128x4xf32>
    %49 = vector.shape_cast %48 : vector<128x4xf32> to vector<8x16x4xf32>
    %cst_34 = arith.constant dense<0xFF800000> : vector<8x4xf32>
    %50 = vector.multi_reduction <maximumf>, %49, %cst_34 [1] : vector<8x16x4xf32> to vector<8x4xf32>
    %51 = arith.maximumf %50, %41 : vector<8x4xf32>
    %52 = arith.subf %41, %51 : vector<8x4xf32>
    %53 = math.exp %52 : vector<8x4xf32>
    %54 = vector.shape_cast %51 : vector<8x4xf32> to vector<8x1x4xf32>
    %55 = vector.broadcast %54 : vector<8x1x4xf32> to vector<8x16x4xf32>
    %56 = arith.subf %49, %55 : vector<8x16x4xf32>
    %57 = math.exp %56 : vector<8x16x4xf32>
    %cst_35 = arith.constant dense<0.000000e+00> : vector<8x4xf32>
    %58 = vector.multi_reduction <add>, %57, %cst_35 [1] : vector<8x16x4xf32> to vector<8x4xf32>
    %59 = arith.addf %53, %58 : vector<8x4xf32>
    %cst_36 = arith.constant 1.000000e+00 : f32
    %60 = vector.broadcast %cst_36 : f32 to vector<8x4xf32>
    %61 = arith.divf %60, %59 : vector<8x4xf32>
    %62 = arith.mulf %53, %61 : vector<8x4xf32>
    %63 = arith.truncf %62 : vector<8x4xf32> to vector<8x4xbf16>
    %cst_37 = arith.constant dense<0.000000e+00> : vector<8x32xf32>
    %64 = tpu.matmul %63, %5, %cst_37 {dimension_numbers = #tpu.dot_dimension_numbers<[1], [0], [0], [1], [0, 0, 1, 1], [], []>} : vector<8x4xbf16>, vector<4x32xbf16>, vector<8x32xf32> -> vector<8x32xf32>
    %65 = vector.shape_cast %61 : vector<8x4xf32> to vector<8x1x4xf32>
    %66 = vector.broadcast %65 : vector<8x1x4xf32> to vector<8x16x4xf32>
    %67 = arith.mulf %57, %66 : vector<8x16x4xf32>
    %68 = vector.shape_cast %67 : vector<8x16x4xf32> to vector<128x4xf32>
    %69 = arith.truncf %68 : vector<128x4xf32> to vector<128x4xbf16>
    %cst_38 = arith.constant dense<0.000000e+00> : vector<128x32xf32>
    %70 = tpu.matmul %69, %5, %cst_38 {dimension_numbers = #tpu.dot_dimension_numbers<[1], [0], [0], [1], [0, 0, 1, 1], [], []>} : vector<128x4xbf16>, vector<4x32xbf16>, vector<128x32xf32> -> vector<128x32xf32>
    %71 = arith.mulf %64, %30 : vector<8x32xf32>
    %72 = arith.mulf %70, %38 : vector<128x32xf32>
    %73 = vector.shape_cast %72 : vector<128x32xf32> to vector<8x16x32xf32>
    %cst_39 = arith.constant dense<0.000000e+00> : vector<8x32xf32>
    %74 = vector.multi_reduction <add>, %73, %cst_39 [1] : vector<8x16x32xf32> to vector<8x32xf32>
    %75 = arith.addf %71, %74 : vector<8x32xf32>
    %76 = arith.truncf %75 : vector<8x32xf32> to vector<8x32xbf16>
    %c0_40 = arith.constant 0 : index
    %c0_41 = arith.constant 0 : index
    %77 = vector.load %arg10[%c0_40, %c0_41] : memref<32x32xbf16, #tpu.memory_space<vmem>>, vector<32x32xbf16>
    %cst_42 = arith.constant dense<0.000000e+00> : vector<8x32xf32>
    %78 = tpu.matmul %76, %77, %cst_42 {dimension_numbers = #tpu.dot_dimension_numbers<[1], [0], [0], [1], [0, 0, 1, 1], [], []>} : vector<8x32xbf16>, vector<32x32xbf16>, vector<8x32xf32> -> vector<8x32xf32>
    %c0_43 = arith.constant 0 : index
    %c0_44 = arith.constant 0 : index
    %79 = vector.load %arg11[%c0_43, %c0_44] : memref<1x32xf32, #tpu.memory_space<vmem>>, vector<1x32xf32>
    %80 = vector.broadcast %79 : vector<1x32xf32> to vector<8x32xf32>
    %81 = arith.addf %78, %80 : vector<8x32xf32>
    %c0_45 = arith.constant 0 : index
    %c0_46 = arith.constant 0 : index
    %82 = vector.load %arg14[%c0_45, %c0_46] : memref<8x32xf32, #tpu.memory_space<vmem>>, vector<8x32xf32>
    tpu.vector_store %arg14[%c0_45, %c0_46], %81 {strides = array<i32>} : memref<8x32xf32, #tpu.memory_space<vmem>>, vector<8x32xf32>,
    return
  }
  func.func @transform_0(%arg0: i32) -> (i32, i32, i32) {
    %c0_i32 = arith.constant 0 : i32
    %c0_i32_0 = arith.constant 0 : i32
    %c0_i32_1 = arith.constant 0 : i32
    return %arg0, %c0_i32, %c0_i32_0 : i32, i32, i32
  }
  func.func @transform_1(%arg0: i32) -> (i32, i32) {
    %c0_i32 = arith.constant 0 : i32
    %c0_i32_0 = arith.constant 0 : i32
    %c0_i32_1 = arith.constant 0 : i32
    return %c0_i32, %c0_i32_0 : i32, i32
  }
  func.func @transform_2(%arg0: i32) -> (i32, i32) {
    %c0_i32 = arith.constant 0 : i32
    %c0_i32_0 = arith.constant 0 : i32
    %c0_i32_1 = arith.constant 0 : i32
    return %c0_i32, %c0_i32_0 : i32, i32
  }
  func.func @transform_3(%arg0: i32) -> (i32, i32) {
    %c0_i32 = arith.constant 0 : i32
    %c0_i32_0 = arith.constant 0 : i32
    %c0_i32_1 = arith.constant 0 : i32
    return %c0_i32, %c0_i32_0 : i32, i32
  }
  func.func @transform_4(%arg0: i32) -> (i32, i32) {
    %c0_i32 = arith.constant 0 : i32
    %c0_i32_0 = arith.constant 0 : i32
    %c0_i32_1 = arith.constant 0 : i32
    return %c0_i32, %c0_i32_0 : i32, i32
  }
  func.func @transform_5(%arg0: i32) -> (i32, i32) {
    %c0_i32 = arith.constant 0 : i32
    %c0_i32_0 = arith.constant 0 : i32
    %c0_i32_1 = arith.constant 0 : i32
    return %c0_i32, %c0_i32_0 : i32, i32
  }
  func.func @transform_6(%arg0: i32) -> (i32, i32) {
    %c0_i32 = arith.constant 0 : i32
    %c0_i32_0 = arith.constant 0 : i32
    %c0_i32_1 = arith.constant 0 : i32
    return %c0_i32, %c0_i32_0 : i32, i32
  }
  func.func @transform_7(%arg0: i32) -> (i32, i32) {
    %c0_i32 = arith.constant 0 : i32
    %c0_i32_0 = arith.constant 0 : i32
    %c0_i32_1 = arith.constant 0 : i32
    return %c0_i32, %c0_i32_0 : i32, i32
  }
  func.func @transform_8(%arg0: i32) -> (i32, i32) {
    %c0_i32 = arith.constant 0 : i32
    %c0_i32_0 = arith.constant 0 : i32
    %c0_i32_1 = arith.constant 0 : i32
    return %c0_i32, %c0_i32_0 : i32, i32
  }
  func.func @transform_9(%arg0: i32) -> (i32, i32) {
    %c0_i32 = arith.constant 0 : i32
    %c0_i32_0 = arith.constant 0 : i32
    %c0_i32_1 = arith.constant 0 : i32
    return %c0_i32, %c0_i32_0 : i32, i32
  }
  func.func @transform_10(%arg0: i32) -> (i32, i32) {
    %c0_i32 = arith.constant 0 : i32
    %c0_i32_0 = arith.constant 0 : i32
    %c0_i32_1 = arith.constant 0 : i32
    return %c0_i32, %c0_i32_0 : i32, i32
  }
  func.func @transform_11(%arg0: i32) -> (i32, i32) {
    %c0_i32 = arith.constant 0 : i32
    %c0_i32_0 = arith.constant 0 : i32
    %c0_i32_1 = arith.constant 0 : i32
    return %c0_i32, %c0_i32_0 : i32, i32
  }
  func.func @transform_12(%arg0: i32) -> (i32, i32) {
    %c0_i32 = arith.constant 0 : i32
    %c0_i32_0 = arith.constant 0 : i32
    %c0_i32_1 = arith.constant 0 : i32
    return %c0_i32, %c0_i32_0 : i32, i32
  }
  func.func @transform_13(%arg0: i32) -> (i32, i32) {
    %c0_i32 = arith.constant 0 : i32
    %c0_i32_0 = arith.constant 0 : i32
    return %arg0, %c0_i32 : i32, i32
  }
}

</mosaic_0001>

<bundles_post_ra>
// kernel: tpu_custom_call.1
= control target key start
LH: loop header
LB: loop body
LE: loop exit
PB: predicated region body
PF: predicated region fallthrough
CT: control target
= control target key end

     0   :  { %18 = vsyncpa [#allocation3], 0  ;;  %s3079_s0 = inlined_call_operand.hbm [shape: bf16[8,16,32], index: 0, kind: input, shape index: {}]   ;;  %s3080_s1 = inlined_call_operand.hbm [shape: f32[1,32], index: 1, kind: input, shape index: {}]   ;;  %s3081_s2 = inlined_call_operand.hbm [shape: bf16[16,32], index: 2, kind: input, shape index: {}]   ;;  %s3082_s3 = inlined_call_operand.vmem [shape: bf16[32,32], index: 3, kind: input, shape index: {}]   ;;  %s3083_s4 = inlined_call_operand.hbm [shape: f32[1,32], index: 4, kind: input, shape index: {}]   ;;  %s3084_s5 = inlined_call_operand.hbm [shape: bf16[32,32], index: 5, kind: input, shape index: {}]   ;;  %s3085_s6 = inlined_call_operand.hbm [shape: f32[1,32], index: 6, kind: input, shape index: {}]   ;;  %s3086_s7 = inlined_call_operand.hbm [shape: bf16[32,32], index: 7, kind: input, shape index: {}]   ;;  %s3087_s8 = inlined_call_operand.hbm [shape: f32[1,32], index: 8, kind: input, shape index: {}]   ;;  %s3088_s9 = inlined_call_operand.vmem [shape: bf16[32,32], index: 9, kind: input, shape index: {}]   ;;  %s3089_s10 = inlined_call_operand.hbm [shape: f32[1,32], index: 10, kind: input, shape index: {}]   ;;  %s3090_s11 = inlined_call_operand.vmem [shape: bf16[32,4], index: 11, kind: input, shape index: {}]   ;;  %s3091_s12 = inlined_call_operand.vmem [shape: bf16[4,32], index: 12, kind: input, shape index: {}]   ;;  %s3092_s13 = inlined_call_operand.hbm [shape: f32[8,32], index: 13, kind: output, shape index: {}]  }
   0x1   :  { %19 = vsyncpa [#allocation6], 0 }
   0x2   :  { %20 = vsyncpa [#allocation9], 0 }
   0x3   :  { %21 = vsyncpa [#allocation12], 0 }
   0x4   :  { %22 = vsyncpa [#allocation15], 0 }
   0x5   :  { %23 = vsyncpa [#allocation4], 0  ;;  %s2384_s25 = smov [#allocation5]   ;;  %s2385_s27 = smov [#allocation8]  }
   0x6   :  { %s42_s26 = sshll.u32 %s2384_s25, 4  ;;  %s66_s28 = sshll.u32 %s2385_s27, 4  ;;  %s43_s26 = int_to_ptr.vmem [resolvable:$true] %s42_s26  ;;  %s67_s28 = int_to_ptr.vmem [resolvable:$true] %s66_s28 }
   0x7   :  { %s2180_s29 = scalar_lea.vmem %s43_s26, 16  ;;  %s2184_s30 = scalar_lea.vmem %s43_s26, 32 }
   0x8   :  { %p2181_p0 = scmp.ne.s32.totalorder %s43_s26, %s2180_s29  ;;  %p2185_p1 = scmp.lt.s32.totalorder %s43_s26, %s43_s26 }
   0x9   :  { %p2186_p2 = scmp.lt.s32.totalorder %s2184_s30, %s2180_s29 }
   0xb   :  { %p2187_p3 = por %p2186_p2, %p2185_p1 }
   0xd   :  { %p2188_p4 = pnand %p2187_p3, %p2181_p0 }
   0xf   :  { %2191 = shalt.err (!%p2188_p4)
}
  0x10   :  { %45 = dma.hbm_to_vmem [thread:$0]  %s3080_s1, 16, %s43_s26, [#allocation6]  }
  0x11   :  { %s2200_s16 = scalar_lea.vmem %s67_s28, 16  ;;  %s2204_s17 = scalar_lea.vmem %s67_s28, 32 }
  0x12   :  { %p2201_p5 = scmp.ne.s32.totalorder %s67_s28, %s2200_s16  ;;  %p2205_p6 = scmp.lt.s32.totalorder %s67_s28, %s67_s28 }
  0x13   :  { %p2206_p7 = scmp.lt.s32.totalorder %s2204_s17, %s2200_s16 }
  0x15   :  { %p2207_p8 = por %p2206_p7, %p2205_p6 }
  0x17   :  { %p2208_p9 = pnand %p2207_p8, %p2201_p5 }
  0x19   :  { %2211 = shalt.err (!%p2208_p9)
}
  0x1a   :  { %69 = dma.hbm_to_vmem [thread:$0]  %s3083_s4, 16, %s67_s28, [#allocation9]  }
  0x1b   :  { %s2386_s20 = smov [#allocation11]   ;;  %s2387_s22 = smov [#allocation14]  }
  0x1c   :  { %s88_s21 = sshll.u32 %s2386_s20, 4  ;;  %s110_s23 = sshll.u32 %s2387_s22, 4  ;;  %s89_s21 = int_to_ptr.vmem [resolvable:$true] %s88_s21  ;;  %s111_s23 = int_to_ptr.vmem [resolvable:$true] %s110_s23 }
  0x1d   :  { %s2220_s24 = scalar_lea.vmem %s89_s21, 16  ;;  %s2224_s1 = scalar_lea.vmem %s89_s21, 32 }
  0x1e   :  { %p2221_p10 = scmp.ne.s32.totalorder %s89_s21, %s2220_s24  ;;  %p2225_p11 = scmp.lt.s32.totalorder %s89_s21, %s89_s21 }
  0x1f   :  { %p2226_p12 = scmp.lt.s32.totalorder %s2224_s1, %s2220_s24 }
  0x21   :  { %p2227_p13 = por %p2226_p12, %p2225_p11 }
  0x23   :  { %p2228_p0 = pnand %p2227_p13, %p2221_p10 }
  0x25   :  { %2231 = shalt.err (!%p2228_p0)
}
  0x26   :  { %91 = dma.hbm_to_vmem [thread:$0]  %s3085_s6, 16, %s89_s21, [#allocation12]  }
  0x27   :  { %s2240_s27 = scalar_lea.vmem %s111_s23, 16  ;;  %s2244_s4 = scalar_lea.vmem %s111_s23, 32 }
  0x28   :  { %p2241_p1 = scmp.ne.s32.totalorder %s111_s23, %s2240_s27  ;;  %p2245_p2 = scmp.lt.s32.totalorder %s111_s23, %s111_s23 }
  0x29   :  { %p2246_p3 = scmp.lt.s32.totalorder %s2244_s4, %s2240_s27 }
  0x2b   :  { %p2247_p4 = por %p2246_p3, %p2245_p2 }
  0x2d   :  { %p2248_p5 = pnand %p2247_p4, %p2241_p1 }
  0x2f   :  { %2251 = shalt.err (!%p2248_p5)
}
  0x30   :  { %113 = dma.hbm_to_vmem [thread:$0]  %s3087_s8, 16, %s111_s23, [#allocation15]  }
  0x31   :  { %s2388_s30 = smov [#allocation2]  }
  0x32   :  { %s29_s14 = sshll.u32 %s2388_s30, 4  ;;  %s30_s14 = int_to_ptr.vmem [resolvable:$true] %s29_s14 }
  0x33   :  { %s2260_s15 = scalar_lea.vmem %s30_s14, 1024  ;;  %p2265_p7 = scmp.lt.s32.totalorder %s30_s14, %s30_s14 }
  0x34   :  { %p2261_p6 = scmp.ne.s32.totalorder %s30_s14, %s2260_s15  ;;  %p2266_p8 = scmp.lt.s32.totalorder %s2260_s15, %s2260_s15 }
  0x36   :  { %p2267_p9 = por %p2266_p8, %p2265_p7 }
  0x38   :  { %p2268_p10 = pnand %p2267_p9, %p2261_p6 }
  0x3a   :  { %2271 = shalt.err (!%p2268_p10)
}
  0x3b   :  { %s2389_s6 = smov 64   ;;  %s2390_s16 = smov 4  }
  0x3c   :  { %35 = dma.hbm_to_vmem [thread:$0]  %s3079_s0, 1024, %s30_s14, [#allocation3], %s2389_s6, %s2389_s6, %s2390_s16  }
  0x3d   :  { %s2391_s8 = smov [#allocation7]   ;;  %s2392_s20 = smov [#allocation10]  }
  0x3e   :  { %s51_s19 = sshll.u32 %s2391_s8, 4  ;;  %s75_s21 = sshll.u32 %s2392_s20, 4  ;;  %s52_s19 = int_to_ptr.vmem [resolvable:$true] %s51_s19  ;;  %s76_s21 = int_to_ptr.vmem [resolvable:$true] %s75_s21 }
  0x3f   :  { %s2280_s22 = scalar_lea.vmem %s52_s19, 128  ;;  %p2285_p12 = scmp.lt.s32.totalorder %s52_s19, %s52_s19 }
  0x40   :  { %p2281_p11 = scmp.ne.s32.totalorder %s52_s19, %s2280_s22  ;;  %p2286_p13 = scmp.lt.s32.totalorder %s2280_s22, %s2280_s22 }
  0x42   :  { %p2287_p0 = por %p2286_p13, %p2285_p12 }
  0x44   :  { %p2288_p1 = pnand %p2287_p0, %p2281_p11 }
  0x46   :  { %2291 = shalt.err (!%p2288_p1)
}
  0x47   :  { %57 = dma.hbm_to_vmem [thread:$0]  %s3081_s2, 128, %s52_s19, [#allocation6], %s2389_s6, %s2389_s6, %s2390_s16  }
  0x48   :  { %s2300_s0 = scalar_lea.vmem %s76_s21, 256  ;;  %p2305_p3 = scmp.lt.s32.totalorder %s76_s21, %s76_s21 }
  0x49   :  { %p2301_p2 = scmp.ne.s32.totalorder %s76_s21, %s2300_s0  ;;  %p2306_p4 = scmp.lt.s32.totalorder %s2300_s0, %s2300_s0 }
  0x4b   :  { %p2307_p5 = por %p2306_p4, %p2305_p3 }
  0x4d   :  { %p2308_p6 = pnand %p2307_p5, %p2301_p2 }
  0x4f   :  { %2311 = shalt.err (!%p2308_p6)
}
  0x50   :  { %81 = dma.hbm_to_vmem [thread:$0]  %s3084_s5, 256, %s76_s21, [#allocation9], %s2389_s6, %s2389_s6, %s2390_s16  }
  0x51   :  { %s2393_s26 = smov [#allocation13]   ;;  %s2394_s4 = smov [#allocation16]  }
  0x52   :  { %s97_s27 = sshll.u32 %s2393_s26, 4  ;;  %s122_s2 = sshll.u32 %s2394_s4, 4  ;;  %s98_s27 = int_to_ptr.vmem [resolvable:$true] %s97_s27  ;;  %s123_s2 = int_to_ptr.vmem [resolvable:$true] %s122_s2 }
  0x53   :  { %s2320_s28 = scalar_lea.vmem %s98_s27, 256  ;;  %p2325_p8 = scmp.lt.s32.totalorder %s98_s27, %s98_s27 }
  0x54   :  { %p2321_p7 = scmp.ne.s32.totalorder %s98_s27, %s2320_s28  ;;  %p2326_p9 = scmp.lt.s32.totalorder %s2320_s28, %s2320_s28 }
  0x56   :  { %p2327_p10 = por %p2326_p9, %p2325_p8 }
  0x58   :  { %p2328_p11 = pnand %p2327_p10, %p2321_p7 }
  0x5a   :  { %2331 = shalt.err (!%p2328_p11)
}
  0x5b   :  { %103 = dma.hbm_to_vmem [thread:$0]  %s3086_s7, 256, %s98_s27, [#allocation12], %s2389_s6, %s2389_s6, %s2390_s16  }
  0x5c   :  { %s2340_s5 = scalar_lea.vmem %s123_s2, 16  ;;  %s2344_s14 = scalar_lea.vmem %s123_s2, 32 }
  0x5d   :  { %p2341_p12 = scmp.ne.s32.totalorder %s123_s2, %s2340_s5  ;;  %p2345_p13 = scmp.lt.s32.totalorder %s123_s2, %s123_s2 }
  0x5e   :  { %p2346_p0 = scmp.lt.s32.totalorder %s2344_s14, %s2340_s5 }
  0x60   :  { %p2347_p1 = por %p2346_p0, %p2345_p13 }
  0x62   :  { %p2348_p2 = pnand %p2347_p1, %p2341_p12 }
  0x64   :  { %2351 = shalt.err (!%p2348_p2)
}
  0x65   :  { %125 = dma.hbm_to_vmem [thread:$0]  %s3089_s10, 16, %s123_s2, [#allocation15]  }
  0x66   :  { %2372 = dma.done.wait [#allocation3], 1024  }
  0x67   :  { %2373 = vsyncadd [#allocation3], 4294966272 }
  0x68   :  { %2374 = dma.done.wait [#allocation6], 144  }
  0x69   :  { %2375 = vsyncadd [#allocation6], 4294967152 }
  0x6a   :  { %2376 = dma.done.wait [#allocation9], 272  }
  0x6b   :  { %2377 = vsyncadd [#allocation9], 4294967024 }
  0x6c   :  { %2378 = dma.done.wait [#allocation12], 272  }
  0x6d   :  { %2379 = vsyncadd [#allocation12], 4294967024 }
  0x6e   :  { %2380 = dma.done.wait [#allocation15], 32  }
  0x6f   :  { %2381 = vsyncadd [#allocation15], 4294967264  ;;  %v3093_v0 = vmov 0.0   ;;  %vm2396_vm0 = vmmov 0   ;;  %v2514_v1 = vld [vmem:[#allocation10 + $0x8] sm:$0xff]   ;;  %v2127_v2 = vld [vmem:[%s3082_s3 + $0x8] sm:$0xff]  }
  0x70   :  { %1994 = vmatprep.subr.bf16.mxu1 %v3093_v0  ;;  %1986 = vmatprep.subr.bf16.mxu0 %v3093_v0  ;;  %v2520_v3 = vld [vmem:[#allocation10] sm:$0xff]   ;;  %v2129_v4 = vld [vmem:[%s3082_s3] sm:$0xff]   ;;  %vm207_vm1 = vcmask 261120   ;;  %v2531_v7 = vld [vmem:[#allocation2 + $0x8] sm:$0xf]  ;;  %vm354_vm2 = vcmask 1041409  }
  0x71   :  { %1990 = vmatprep.mubr.msk.bf16.mxu0 %vm2396_vm0, %v3093_v0  ;;  %1998 = vmatprep.mubr.msk.bf16.mxu1 %vm2396_vm0, %v3093_v0  ;;  %v2527_v5 = vld [vmem:[#allocation2] sm:$0xf]  ;;  %v2529_v6 = vld [vmem:[#allocation2 + $0x4] sm:$0xf]  ;;  %v2533_v8 = vld [vmem:[#allocation2 + $0xc] sm:$0xf]  ;;  %v193_v16 = vunpack.c.l.bf16 %v2531_v7 }
  0x72   :  { %1995 = vmatpush3.bf16.msra.mxu1 %v2514_v1  ;;  %1987 = vmatpush3.bf16.msra.mxu0 %v2127_v2  ;;  %v2535_v9 = vld [vmem:[#allocation2 + $0x10] sm:$0xf]  ;;  %v2537_v10 = vld [vmem:[#allocation2 + $0x14] sm:$0xf]  ;;  %v191_v11 = vunpack.c.l.bf16 %v2527_v5  ;;  %v2541_v12 = vld [vmem:[#allocation2 + $0x18] sm:$0xf]  ;;  %v192_v15 = vunpack.c.l.bf16 %v2529_v6  ;;  %v194_v17 = vunpack.c.l.bf16 %v2533_v8 }
  0x73   :  { %1996 = vmatprep.subr.bf16.mxu1 %v3093_v0  ;;  %1988 = vmatprep.subr.bf16.mxu0 %v3093_v0  ;;  %v2543_v13 = vld [vmem:[#allocation2 + $0x1c] sm:$0xf]  ;;  %v2545_v14 = vld [vmem:[#allocation2 + $0x20] sm:$0xf]  ;;  %v2551_v18 = vld [vmem:[#allocation2 + $0x24] sm:$0xf]  ;;  %v195_v21 = vunpack.c.l.bf16 %v2535_v9  ;;  %v196_v22 = vunpack.c.l.bf16 %v2537_v10  ;;  %v197_v23 = vunpack.c.l.bf16 %v2541_v12 }
  0x74   :  { %v2553_v19 = vld [vmem:[#allocation2 + $0x28] sm:$0xf]  ;;  %v2555_v20 = vld [vmem:[#allocation2 + $0x2c] sm:$0xf]  ;;  %v198_v24 = vunpack.c.l.bf16 %v2543_v13  ;;  %v2561_v25 = vld [vmem:[#allocation2 + $0x30] sm:$0xf]  ;;  %v199_v28 = vunpack.c.l.bf16 %v2545_v14  ;;  %v200_v29 = vunpack.c.l.bf16 %v2551_v18 }
  0x75   :  { %v2563_v26 = vld [vmem:[#allocation2 + $0x34] sm:$0xf]  ;;  %v2565_v27 = vld [vmem:[#allocation2 + $0x38] sm:$0xf]  ;;  %v201_v30 = vunpack.c.l.bf16 %v2553_v19  ;;  %v202_v31 = vunpack.c.l.bf16 %v2555_v20  ;;  %v2572_v32 = vld [vmem:[#allocation2 + $0x3c] sm:$0xf]  ;;  %v203_v33 = vunpack.c.l.bf16 %v2561_v25 }
  0x76   :  { %1997 = vmatpush3.bf16.msra.mxu1 %v2520_v3  ;;  %1989 = vmatpush3.bf16.msra.mxu0 %v2129_v4  ;;  %v204_v34 = vunpack.c.l.bf16 %v2563_v26  ;;  %v205_v35 = vunpack.c.l.bf16 %v2565_v27  ;;  %v208_v36 = vsel %vm207_vm1, %v191_v11, 0.0  ;;  %v206_v37 = vunpack.c.l.bf16 %v2572_v32 }
  0x77   :  { %2010 = vmatprep.subr.bf16.mxu1 %v2514_v1  ;;  %2002 = vmatprep.subr.bf16.mxu0 %v3093_v0  ;;  %v209_v38 = vsel %vm207_vm1, %v192_v15, 0.0  ;;  %v217_v39 = vsel %vm207_vm1, %v193_v16, 0.0  ;;  %v218_v40 = vsel %vm207_vm1, %v194_v17, 0.0  ;;  %v226_v43 = vsel %vm207_vm1, %v195_v21, 0.0 }
  0x78   :  { %v210_v41 = vadd.f32 %v209_v38, %v208_v36  ;;  %v219_v42 = vadd.f32 %v218_v40, %v217_v39  ;;  %v227_v44 = vsel %vm207_vm1, %v196_v22, 0.0  ;;  %v235_v46 = vsel %vm207_vm1, %v197_v23, 0.0 }
  0x79   :  { %v228_v45 = vadd.f32 %v227_v44, %v226_v43  ;;  %v236_v47 = vsel %vm207_vm1, %v198_v24, 0.0  ;;  %v244_v48 = vsel %vm207_vm1, %v199_v28, 0.0  ;;  %v245_v52 = vsel %vm207_vm1, %v200_v29, 0.0 }
  0x7a   :  { %v211_v49 = vrot.slane %v210_v41, 4  ;;  %v220_v50 = vrot.slane %v219_v42, 4  ;;  %v237_v51 = vadd.f32 %v236_v47, %v235_v46  ;;  %v246_v54 = vadd.f32 %v245_v52, %v244_v48 }
  0x7b   :  { %v229_v53 = vrot.slane %v228_v45, 4  ;;  %v253_v55 = vsel %vm207_vm1, %v201_v30, 0.0  ;;  %v254_v56 = vsel %vm207_vm1, %v202_v31, 0.0  ;;  %v262_v63 = vsel %vm207_vm1, %v203_v33, 0.0 }
  0x7c   :  { %v212_v57 = vadd.f32 %v211_v49, %v210_v41  ;;  %v221_v58 = vadd.f32 %v220_v50, %v219_v42  ;;  %v238_v59 = vrot.slane %v237_v51, 4  ;;  %v255_v60 = vadd.f32 %v254_v56, %v253_v55 }
  0x7d   :  { %v230_v61 = vadd.f32 %v229_v53, %v228_v45  ;;  %v247_v62 = vrot.slane %v246_v54, 4  ;;  %v263_v2 = vsel %vm207_vm1, %v204_v34, 0.0  ;;  %v271_v23 = vsel %vm207_vm1, %v205_v35, 0.0  ;;  %v1869_v53 = vld [vmem:[#allocation5] ss:$0 sm:$0xff] }
  0x7e   :  { %v213_v4 = vrot.slane %v212_v57, 2  ;;  %v222_v11 = vrot.slane %v221_v58, 2  ;;  %v239_v15 = vadd.f32 %v238_v59, %v237_v51  ;;  %v256_v16 = vrot.slane %v255_v60, 4 }
  0x7f   :  { %v231_v17 = vrot.slane %v230_v61, 2  ;;  %v248_v21 = vadd.f32 %v247_v62, %v246_v54  ;;  %v264_v22 = vadd.f32 %v263_v2, %v262_v63  ;;  %v272_v33 = vsel %vm207_vm1, %v206_v37, 0.0 }
  0x80   :  { %v214_v24 = vadd.f32 %v213_v4, %v212_v57  ;;  %v223_v28 = vadd.f32 %v222_v11, %v221_v58  ;;  %v240_v29 = vrot.slane %v239_v15, 2  ;;  %v257_v30 = vadd.f32 %v256_v16, %v255_v60 }
  0x81   :  { %v232_v31 = vadd.f32 %v231_v17, %v230_v61  ;;  %v249_v36 = vrot.slane %v248_v21, 2  ;;  %v265_v38 = vrot.slane %v264_v22, 4  ;;  %v273_v45 = vadd.f32 %v272_v33, %v271_v23 }
  0x82   :  { %v215_v39 = vrot.slane %v214_v24, 1  ;;  %v224_v34 = vrot.slane %v223_v28, 1  ;;  %v241_v40 = vadd.f32 %v240_v29, %v239_v15  ;;  %v258_v41 = vrot.slane %v257_v30, 2 }
  0x83   :  { %v233_v42 = vrot.slane %v232_v31, 1  ;;  %v250_v43 = vadd.f32 %v249_v36, %v248_v21  ;;  %v266_v44 = vadd.f32 %v265_v38, %v264_v22  ;;  %v274_v52 = vrot.slane %v273_v45, 4 }
  0x84   :  { %v216_v46 = vadd.f32 %v215_v39, %v214_v24  ;;  %v225_v47 = vadd.f32 %v224_v34, %v223_v28  ;;  %v242_v35 = vrot.slane %v241_v40, 1  ;;  %v259_v48 = vadd.f32 %v258_v41, %v257_v30 }
  0x85   :  { %v234_v49 = vadd.f32 %v233_v42, %v232_v31  ;;  %v251_v50 = vrot.slane %v250_v43, 1  ;;  %v267_v51 = vrot.slane %v266_v44, 2  ;;  %vm357_vm3 = vcmask 1042434  }
  0x86   :  { %v243_v54 = vadd.f32 %v242_v35, %v241_v40  ;;  %v260_v37 = vrot.slane %v259_v48, 1  ;;  %v281_v55 = vmul.f32 0.0625, %v216_v46  ;;  %v282_v56 = vmul.f32 0.0625, %v225_v47 }
  0x87   :  { %v252_v57 = vadd.f32 %v251_v50, %v250_v43  ;;  %v268_v58 = vadd.f32 %v267_v51, %v266_v44  ;;  %v275_v59 = vadd.f32 %v274_v52, %v273_v45  ;;  %v283_v60 = vmul.f32 0.0625, %v234_v49 }
  0x88   :  { %v261_v61 = vadd.f32 %v260_v37, %v259_v48  ;;  %v284_v62 = vmul.f32 0.0625, %v243_v54  ;;  %v296_v63 = vadd.f32 %v1869_v53, %v281_v55  ;;  %v297_v2 = vadd.f32 %v1869_v53, %v282_v56 }
  0x89   :  { %v269_v4 = vrot.slane %v268_v58, 1  ;;  %v276_v11 = vrot.slane %v275_v59, 2  ;;  %v285_v15 = vmul.f32 0.0625, %v252_v57  ;;  %v298_v16 = vadd.f32 %v1869_v53, %v283_v60  ;;  %v2598_v60 = vld [vmem:[#allocation7] sm:$0xf] }
  0x8a   :  { %v286_v17 = vmul.f32 0.0625, %v261_v61  ;;  %v299_v21 = vadd.f32 %v1869_v53, %v284_v62  ;;  %v304_v22 = vpack.c.bf16 %v296_v63, %v296_v63  ;;  %v305_v23 = vpack.c.bf16 %v297_v2, %v297_v2  ;;  %v2600_v61 = vld [vmem:[#allocation7 + $0x4] sm:$0xf] }
  0x8b   :  { %v270_v24 = vadd.f32 %v269_v4, %v268_v58  ;;  %v277_v28 = vadd.f32 %v276_v11, %v275_v59  ;;  %v300_v29 = vadd.f32 %v1869_v53, %v285_v15  ;;  %v306_v30 = vpack.c.bf16 %v298_v16, %v298_v16 }
  0x8c   :  { %v301_v31 = vadd.f32 %v1869_v53, %v286_v17  ;;  %v307_v36 = vpack.c.bf16 %v299_v21, %v299_v21  ;;  %v345_v38 = vunpack.c.l.b16 %v304_v22  ;;  %v346_v33 = vunpack.c.l.b16 %v305_v23  ;;  %v2130_v23 = vld [vmem:[#allocation13 + $0x8] sm:$0xff]  }
  0x8d   :  { %v278_v39 = vrot.slane %v277_v28, 1  ;;  %v287_v34 = vmul.f32 0.0625, %v270_v24  ;;  %v308_v40 = vpack.c.bf16 %v300_v29, %v300_v29  ;;  %v347_v41 = vunpack.c.l.b16 %v306_v30  ;;  %v2131_v29 = vld [vmem:[#allocation13] sm:$0xff]  }
  0x8e   :  { %v309_v42 = vpack.c.bf16 %v301_v31, %v301_v31  ;;  %v348_v43 = vunpack.c.l.b16 %v307_v36  ;;  %v353_v44 = vrot.slane %v346_v33, 7  ;;  %vm360_vm4 = vcmask 1043459  }
  0x8f   :  { %v279_v45 = vadd.f32 %v278_v39, %v277_v28  ;;  %v302_v46 = vadd.f32 %v1869_v53, %v287_v34  ;;  %v349_v47 = vunpack.c.l.b16 %v308_v40  ;;  %v356_v35 = vrot.slane %v347_v41, 6  ;;  %v1870_v41 = vld [vmem:[#allocation8] ss:$0 sm:$0xff] }
  0x90   :  { %v350_v48 = vunpack.c.l.b16 %v309_v42  ;;  %v355_v49 = vsel %vm354_vm2, %v353_v44, %v345_v38  ;;  %v359_v50 = vrot.slane %v348_v43, 5  ;;  %vm363_vm5 = vcmask 1044484   ;;  %v2674_v42 = vld [vmem:[#allocation11] ss:$0 sm:$0xff] }
  0x91   :  { %v288_v51 = vmul.f32 0.0625, %v279_v45  ;;  %v310_v52 = vpack.c.bf16 %v302_v46, %v302_v46  ;;  %v358_v54 = vsel %vm357_vm3, %v356_v35, %v355_v49  ;;  %v362_v37 = vrot.slane %v349_v47, 4 }
  0x92   :  { %v361_v55 = vsel %vm360_vm4, %v359_v50, %v358_v54  ;;  %v365_v56 = vrot.slane %v350_v48, 3  ;;  %vm366_vm6 = vcmask 1045509   ;;  %vm369_vm7 = vcmask 1046534  }
  0x93   :  { %v303_v57 = vadd.f32 %v1869_v53, %v288_v51  ;;  %v351_v58 = vunpack.c.l.b16 %v310_v52  ;;  %v364_v59 = vsel %vm363_vm5, %v362_v37, %v361_v55  ;;  %v314_v11 = vadd.bf16 %v2598_v60, %v2527_v5 }
  0x94   :  { %v367_v63 = vsel %vm366_vm6, %v365_v56, %v364_v59  ;;  %v315_v15 = vadd.bf16 %v2600_v61, %v2529_v6  ;;  %vm372_vm8 = vcmask 1047559   ;;  %v316_v24 = vadd.bf16 %v2598_v60, %v2531_v7 }
  0x95   :  { %v311_v62 = vpack.c.bf16 %v303_v57, %v303_v57  ;;  %v368_v2 = vrot.slane %v351_v58, 2  ;;  %v317_v5 = vadd.bf16 %v2600_v61, %v2533_v8  ;;  %v318_v6 = vadd.bf16 %v2598_v60, %v2535_v9  ;;  %v2132_v8 = vld [vmem:[%s3090_s11 + $0x8] sm:$0xff]  }
  0x96   :  { %v1882_v21 = vcombine.low %v314_v11, %v315_v15  ;;  %v319_v28 = vadd.bf16 %v2600_v61, %v2537_v10  ;;  %v320_v9 = vadd.bf16 %v2598_v60, %v2541_v12  ;;  %v321_v10 = vadd.bf16 %v2600_v61, %v2543_v13 }
  0x97   :  { %v352_v4 = vunpack.c.l.b16 %v311_v62  ;;  %v370_v53 = vsel %vm369_vm7, %v368_v2, %v367_v63  ;;  %v1883_v7 = vcombine.low %v316_v24, %v317_v5  ;;  %v323_v30 = vadd.bf16 %v2600_v61, %v2551_v18 }
  0x98   :  { %v1885_v31 = vcombine.low %v320_v9, %v321_v10  ;;  %v324_v13 = vadd.bf16 %v2598_v60, %v2553_v19  ;;  %v326_v18 = vadd.bf16 %v2598_v60, %v2561_v25  ;;  %v327_v36 = vadd.bf16 %v2600_v61, %v2563_v26  ;;  %v2133_v26 = vld [vmem:[%s3090_s11] sm:$0xff]  }
  0x99   :  { %v371_v16 = vrot.slane %v352_v4, 1  ;;  %v328_v19 = vadd.bf16 %v2598_v60, %v2565_v27  ;;  %v2397_v27 = vmov 1966171168   ;;  %v868_v39 = vlaneseq }
  0x9a   :  { %v1888_v33 = vcombine.low %v326_v18, %v327_v36  ;;  %vm1397_vm9 = vcmask 1041408   ;;  %vm1098_vm10 = vcmask 31744  }
  0x9b   :  { %v373_v17 = vsel %vm372_vm8, %v371_v16, %v370_v53  ;;  %v869_v40 = vshrl.u32 %v868_v39, 7 }
  0x9c   :  { %v374_v22 = vpack.c.b16 %v373_v17, %v373_v17 }
  0x9e   :  { %1991 = vmatmul.mubr.msk.bf16.vlgmr.msra.gmra.mxu0 %vm207_vm1, %v374_v22  ;;  %1999 = vmatmul.mubr.msk.bf16.vlgmr.msra.gmra.mxu1 %vm207_vm1, %v374_v22 }
  0x9f   :  { %2011 = vmatpush3.bf16.msra.mxu1 %v2514_v1  ;;  %2014 = vmatprep.mubr.msk.bf16.mxu1 %vm207_vm1, %v1882_v21  ;;  %v1884_v1 = vcombine.low %v318_v6, %v319_v28 }
  0xa0   :  { %2012 = vmatprep.subr.bf16.mxu1 %v2520_v3  ;;  %2003 = vmatpush3.bf16.msra.mxu0 %v2130_v23 }
  0xa1   :  { %2004 = vmatprep.subr.bf16.mxu0 %v3093_v0  ;;  %2006 = vmatprep.mubr.msk.bf16.mxu0 %vm2396_vm0, %v3093_v0 }
  0xa3   :  { %2013 = vmatpush3.bf16.msra.mxu1 %v2520_v3  ;;  %v322_v3 = vadd.bf16 %v2598_v60, %v2545_v14  ;;  %v325_v14 = vadd.bf16 %v2600_v61, %v2555_v20  ;;  %v329_v20 = vadd.bf16 %v2600_v61, %v2572_v32  ;;  %v866_v32 = vunpack.c.l.s4 %v2397_v27 }
  0xa4   :  { %2005 = vmatpush3.bf16.msra.mxu0 %v2131_v29  ;;  %2050 = vmatprep.subr.bf16.mxu1 %v3093_v0  ;;  %v2687_v61 = vsub.s32 0, %v869_v40 }
  0xa5   :  { %2030 = vmatprep.subr.bf16.mxu0 %v2130_v23  ;;  %v1886_v12 = vcombine.low %v322_v3, %v323_v30  ;;  %v1887_v38 = vcombine.low %v324_v13, %v325_v14  ;;  %v1889_v25 = vcombine.low %v328_v19, %v329_v20  ;;  %v867_v34 = vunpack.c.0.s8 %v866_v32 }
  0xa6   :  { %2015 = vmatmul.mubr.msk.bf16.vlgmr.msra.gmra.mxu1 %vm207_vm1, %v1883_v7 }
  0xa7   :  { %2018 = vmatprep.mubr.msk.bf16.mxu1 %vm207_vm1, %v1884_v1  ;;  %2007 = vmatmul.mubr.msk.bf16.vlgmr.msra.gmra.mxu0 %vm207_vm1, %v374_v22  ;;  %v2676_v43 = vsub.s32 %v867_v34, %v869_v40 }
  0xa8   :  { %2031 = vmatpush3.bf16.msra.mxu0 %v2130_v23  ;;  %2034 = vmatprep.mubr.msk.bf16.mxu0 %vm207_vm1, %v1882_v21 }
  0xa9   :  { %2032 = vmatprep.subr.bf16.mxu0 %v2131_v29  ;;  %2051 = vmatpush3.bf16.msra.mxu1 %v2132_v8 }
  0xaa   :  { %2052 = vmatprep.subr.bf16.mxu1 %v3093_v0 }
  0xac   :  { %2033 = vmatpush3.bf16.msra.mxu0 %v2131_v29 }
  0xad   :  { %2058 = vmatprep.subr.bf16.mxu0 %v2132_v8  ;;  %2053 = vmatpush3.bf16.msra.mxu1 %v2133_v26 }
  0xae   :  { %2019 = vmatmul.mubr.msk.bf16.gmra.mxu1 %vm207_vm1, %v1885_v31  ;;  %2078 = vmatprep.subr.bf16.mxu1 %v3093_v0 }
  0xaf   :  { %2022 = vmatprep.mubr.msk.bf16.mxu1 %vm207_vm1, %v1886_v12  ;;  %2035 = vmatmul.mubr.msk.bf16.vlgmr.msra.gmra.mxu0 %vm207_vm1, %v1883_v7 }
  0xb0   :  { %2059 = vmatpush3.bf16.msra.mxu0 %v2132_v8  ;;  %2038 = vmatprep.mubr.msk.bf16.mxu0 %vm207_vm1, %v1884_v1 }
  0xb1   :  { %2060 = vmatprep.subr.bf16.mxu0 %v2133_v26 }
  0xb4   :  { %2061 = vmatpush3.bf16.msra.mxu0 %v2133_v26 }
  0xb5   :  { %2102 = vmatprep.subr.bf16.mxu0 %v3093_v0 }
  0xb6   :  { %2023 = vmatmul.mubr.msk.bf16.gmra.mxu1 %vm207_vm1, %v1887_v38 }
  0xb7   :  { %2026 = vmatprep.mubr.msk.bf16.mxu1 %vm207_vm1, %v1888_v33  ;;  %2039 = vmatmul.mubr.msk.bf16.gmra.mxu0 %vm207_vm1, %v1885_v31 }
  0xb8   :  { %2042 = vmatprep.mubr.msk.bf16.mxu0 %vm207_vm1, %v1886_v12 }
  0xbe   :  { %2027 = vmatmul.mubr.msk.bf16.gmra.mxu1 %vm207_vm1, %v1889_v25 }
  0xbf   :  { %2043 = vmatmul.mubr.msk.bf16.gmra.mxu0 %vm207_vm1, %v1887_v38  ;;  %2054 = vmatprep.mubr.msk.bf16.mxu1 %vm2396_vm0, %v3093_v0 }
  0xc0   :  { %2046 = vmatprep.mubr.msk.bf16.mxu0 %vm207_vm1, %v1888_v33 }
  0xc7   :  { %2047 = vmatmul.mubr.msk.bf16.gmra.mxu0 %vm207_vm1, %v1889_v25 }
 0x15e   :  { %v424_v44 = vpop.f32.mrf.mxu0  ;;  %v483_v45 = vpop.f32.mrf.mxu1 }
 0x15f   :  { %v425_v46 = vadd.f32 %v1870_v41, %v424_v44  ;;  %v484_v47 = vadd.f32 %v2674_v42, %v483_v45 }
 0x160   :  { %v2000_v35 = vpop.f32.mrf.mxu1  ;;  %v1992_v48 = vpop.f32.mrf.mxu0 }
 0x161   :  { %v871_v49 = vrot.slane %v425_v46, %v2676_v43  ;;  %v806_v50 = vmul.f32 %v484_v47, %v425_v46  ;;  %v864_v16 = vcombine.high %v425_v46, %v425_v46 }
 0x162   :  { %v486_v51 = vpop.f32.mrf.mxu1  ;;  %v427_v52 = vpop.f32.mrf.mxu0 }
 0x163   :  { %v807_v54 = vpack.c.bf16 %v806_v50, %v806_v50  ;;  %v879_v37 = vcombine.high %v871_v49, %v871_v49  ;;  %v887_v58 = vrot.slane %v871_v49, %v2676_v43  ;;  %v878_v7 = vrot.slane %v864_v16, %v2676_v43 }
 0x164   :  { %v2001_v55 = vpop.f32.mrf.mxu1  ;;  %v1993_v56 = vpop.f32.mrf.mxu0 }
 0x165   :  { %2055 = vmatmul.mubr.msk.bf16.vlgmr.msra.gmra.mxu1 %vm207_vm1, %v807_v54  ;;  %v901_v60 = vrot.slane %v879_v37, %v2676_v43  ;;  %v916_v11 = vrot.slane %v887_v58, %v2687_v61  ;;  %v909_v3 = vcombine.high %v887_v58, %v887_v58  ;;  %v880_v38 = vcombine.high %v878_v7, %v878_v7 }
 0x166   :  { %v2016_v57 = vpop.f32.mrf.mxu1  ;;  %2080 = vmatprep.mubr.msk.bf16.mxu1 %vm2396_vm0, %v3093_v0  ;;  %v894_v41 = vrot.slane %v878_v7, %v2676_v43 }
 0x167   :  { %v2684_v59 = vpop.f32.mrf.mxu0  ;;  %v655_v17 = vadd.f32 %v2016_v57, %v2674_v42  ;;  %v920_v21 = vrot.slane %v901_v60, %v2687_v61  ;;  %v911_v8 = vcombine.high %v901_v60, %v901_v60  ;;  %v924_v33 = vrot.slane %v909_v3, %v2687_v61 }
 0x168   :  { %3094 = vst [vmem:[#allocation24_spill] sm:$0xff] %v2684_v59  ;;  %v646_v62 = vpop.f32.mrf.mxu1  ;;  %v908_v39 = vrot.slane %v880_v38, %v2676_v43  ;;  %v932_v50 = vrot.slane %v894_v41, %v2687_v61 }
 0x169   :  { %v2008_v63 = vpop.f32.mrf.mxu0  ;;  %v647_v4 = vadd.f32 %v2674_v42, %v646_v62  ;;  %v955_v1 = vmul.f32 %v920_v21, %v655_v17  ;;  %v928_v18 = vrot.slane %v911_v8, %v2687_v61  ;;  %v910_v62 = vcombine.high %v894_v41, %v894_v41 }
 0x16a   :  { %v2017_v2 = vpop.f32.mrf.mxu1  ;;  %v936_v48 = vrot.slane %v908_v39, %v2687_v61  ;;  %v912_v57 = vcombine.high %v908_v39, %v908_v39 }
 0x16b   :  { %v658_v15 = vadd.f32 %v2017_v2, %v2674_v42  ;;  %v545_v53 = vpop.f32.mrf.mxu0  ;;  %v953_v28 = vmul.f32 %v916_v11, %v647_v4  ;;  %v940_v17 = vrot.slane %v910_v62, %v2687_v61 }
 0x16c   :  { %v649_v22 = vpop.f32.mrf.mxu1  ;;  %v944_v53 = vrot.slane %v912_v57, %v2687_v61 }
 0x16d   :  { %v650_v23 = vadd.f32 %v2674_v42, %v649_v22  ;;  %v2009_v24 = vpop.f32.mrf.mxu0  ;;  %v956_v5 = vmul.f32 %v920_v21, %v658_v15 }
 0x16e   :  { %v2020_v6 = vpop.f32.mrf.mxu1 }
 0x16f   :  { %v954_v29 = vmul.f32 %v916_v11, %v650_v23  ;;  %v970_v30 = vpack.c.bf16 %v956_v5, %v955_v1  ;;  %v671_v14 = vadd.f32 %v2020_v6, %v2674_v42 }
 0x170   :  { %v662_v9 = vpop.f32.mrf.mxu1 }
 0x171   :  { %v969_v10 = vpack.c.bf16 %v954_v29, %v953_v28  ;;  %v663_v12 = vadd.f32 %v2674_v42, %v662_v9  ;;  %v959_v32 = vmul.f32 %v928_v18, %v671_v14  ;;  %v2726_v29 = vpop.f32.mrf.mxu0 }
 0x172   :  { %v2021_v31 = vpop.f32.mrf.mxu1 }
 0x173   :  { %v674_v13 = vadd.f32 %v2021_v31, %v2674_v42  ;;  %2062 = vmatprep.mubr.msk.bf16.mxu0 %vm207_vm1, %v969_v10  ;;  %v957_v26 = vmul.f32 %v924_v33, %v663_v12  ;;  %v2728_v7 = vpop.f32.mrf.mxu0 }
 0x174   :  { %v665_v36 = vpop.f32.mrf.mxu1  ;;  %2063 = vmatmul.mubr.msk.bf16.vlgmr.msra.gmra.mxu0 %vm207_vm1, %v970_v30  ;;  %v190_v30 = vld [vmem:[%s3091_s12] sm:$0x3] }
 0x175   :  { %v666_v19 = vadd.f32 %v2674_v42, %v665_v36  ;;  %v960_v20 = vmul.f32 %v928_v18, %v674_v13  ;;  %v2730_v1 = vpop.f32.mrf.mxu0  ;;  %v2747_v12 = vsel %vm1397_vm9, %v190_v30, 0 }
 0x176   :  { %v2024_v25 = vpop.f32.mrf.mxu1  ;;  %2079 = vmatpush3.bf16.msra.mxu1 %v2747_v12 }
 0x177   :  { %v958_v27 = vmul.f32 %v924_v33, %v666_v19  ;;  %v972_v44 = vpack.c.bf16 %v960_v20, %v959_v32  ;;  %v687_v35 = vadd.f32 %v2024_v25, %v2674_v42  ;;  %2110 = vmatprep.subr.msk.bf16.mxu1 %vm1397_vm9, %v190_v30 }
 0x178   :  { %v678_v34 = vpop.f32.mrf.mxu1 }
 0x179   :  { %v971_v40 = vpack.c.bf16 %v958_v27, %v957_v26  ;;  %v679_v46 = vadd.f32 %v2674_v42, %v678_v34  ;;  %v963_v56 = vmul.f32 %v936_v48, %v687_v35 }
 0x17a   :  { %v2025_v45 = vpop.f32.mrf.mxu1 }
 0x17b   :  { %v690_v47 = vadd.f32 %v2025_v45, %v2674_v42  ;;  %2066 = vmatprep.mubr.msk.bf16.mxu0 %vm207_vm1, %v971_v40  ;;  %v961_v37 = vmul.f32 %v932_v50, %v679_v46 }
 0x17c   :  { %v681_v49 = vpop.f32.mrf.mxu1  ;;  %2067 = vmatmul.mubr.msk.bf16.gmra.mxu0 %vm207_vm1, %v972_v44 }
 0x17d   :  { %v682_v51 = vadd.f32 %v2674_v42, %v681_v49  ;;  %v964_v52 = vmul.f32 %v936_v48, %v690_v47 }
 0x17e   :  { %v2028_v54 = vpop.f32.mrf.mxu1 }
 0x17f   :  { %v962_v55 = vmul.f32 %v932_v50, %v682_v51  ;;  %v974_v63 = vpack.c.bf16 %v964_v52, %v963_v56  ;;  %v703_v15 = vadd.f32 %v2028_v54, %v2674_v42 }
 0x180   :  { %v694_v58 = vpop.f32.mrf.mxu1 }
 0x181   :  { %v973_v60 = vpack.c.bf16 %v962_v55, %v961_v37  ;;  %v695_v4 = vadd.f32 %v2674_v42, %v694_v58  ;;  %v967_v5 = vmul.f32 %v944_v53, %v703_v15 }
 0x182   :  { %v2029_v2 = vpop.f32.mrf.mxu1 }
 0x183   :  { %v706_v11 = vadd.f32 %v2029_v2, %v2674_v42  ;;  %2070 = vmatprep.mubr.msk.bf16.mxu0 %vm207_vm1, %v973_v60  ;;  %v965_v23 = vmul.f32 %v940_v17, %v695_v4 }
 0x184   :  { %v697_v16 = vpop.f32.mrf.mxu1  ;;  %2071 = vmatmul.mubr.msk.bf16.gmra.mxu0 %vm207_vm1, %v974_v63 }
 0x185   :  { %v698_v21 = vadd.f32 %v2674_v42, %v697_v16  ;;  %v968_v22 = vmul.f32 %v944_v53, %v706_v11  ;;  %v2732_v42 = vpop.f32.mrf.mxu0 }
 0x187   :  { %v966_v24 = vmul.f32 %v940_v17, %v698_v21  ;;  %v976_v28 = vpack.c.bf16 %v968_v22, %v967_v5  ;;  %v2734_v8 = vpop.f32.mrf.mxu0 }
 0x189   :  { %v975_v6 = vpack.c.bf16 %v966_v24, %v965_v23  ;;  %v2736_v9 = vpop.f32.mrf.mxu0 }
 0x18b   :  { %2074 = vmatprep.mubr.msk.bf16.mxu0 %vm207_vm1, %v975_v6  ;;  %v2738_v10 = vpop.f32.mrf.mxu0 }
 0x18c   :  { %2075 = vmatmul.mubr.msk.bf16.gmra.mxu0 %vm207_vm1, %v976_v28 }
 0x18d   :  { %2106 = vmatprep.mubr.msk.bf16.mxu0 %vm2396_vm0, %v3093_v0  ;;  %v2740_v3 = vpop.f32.mrf.mxu0 }
 0x18f   :  { %v2745_v31 = vpop.f32.mrf.mxu0 }
 0x191   :  { %v2750_v13 = vpop.f32.mrf.mxu0 }
 0x193   :  { %v2752_v14 = vpop.f32.mrf.mxu0 }
 0x195   :  { %v2754_v18 = vpop.f32.mrf.mxu0 }
 0x197   :  { %v2758_v38 = vpop.f32.mrf.mxu0 }
 0x199   :  { %v2760_v20 = vpop.f32.mrf.mxu0 }
 0x19b   :  { %v2762_v26 = vpop.f32.mrf.mxu0 }
 0x19c   :  { %3095 = vst [vmem:[#allocation25_spill] sm:$0xff] %v2762_v26 }
 0x19d   :  { %v2764_v27 = vpop.f32.mrf.mxu0 }
 0x19e   :  { %3096 = vst [vmem:[#allocation26_spill] sm:$0xff] %v2764_v27 }
 0x225   :  { %v2756_v36 = vpop.f32.mrf.mxu1 }
 0x226   :  { %v1172_v21 = vrot.slane %v2756_v36, 1 }
 0x227   :  { %v2056_v33 = vpop.f32.mrf.mxu1 }
 0x229   :  { %v860_v19 = vpop.f32.mrf.mxu1 }
 0x22b   :  { %v2057_v25 = vpop.f32.mrf.mxu1 }
 0x234   :  { %v2064_v32 = vpop.f32.mrf.mxu0 }
 0x235   :  { %v1108_v40 = vsel %vm1098_vm10, %v2064_v32, -inf }
 0x236   :  { %v2766_v39 = vpop.f32.mrf.mxu0 }
 0x237   :  { %v1099_v46 = vsel %vm1098_vm10, %v2766_v39, -inf }
 0x238   :  { %v2768_v34 = vpop.f32.mrf.mxu0 }
 0x239   :  { %v1109_v41 = vsel %vm1098_vm10, %v2768_v34, -inf }
 0x23a   :  { %v1110_v44 = vmax.f32 %v1108_v40, %v1109_v41  ;;  %v2773_v45 = vpop.f32.mrf.mxu0 }
 0x23b   :  { %v1100_v47 = vsel %vm1098_vm10, %v2773_v45, -inf }
 0x23c   :  { %v1111_v35 = vrot.slane %v1110_v44, 4  ;;  %v1101_v48 = vmax.f32 %v1099_v46, %v1100_v47  ;;  %v2779_v49 = vpop.f32.mrf.mxu0 }
 0x23d   :  { %v1126_v56 = vsel %vm1098_vm10, %v2779_v49, -inf }
 0x23e   :  { %v1112_v50 = vmax.f32 %v1110_v44, %v1111_v35  ;;  %v1102_v51 = vrot.slane %v1101_v48, 4  ;;  %v2781_v52 = vpop.f32.mrf.mxu0 }
 0x23f   :  { %v1117_v2 = vsel %vm1098_vm10, %v2781_v52, -inf }
 0x240   :  { %v1113_v54 = vrot.slane %v1112_v50, 2  ;;  %v1103_v37 = vmax.f32 %v1101_v48, %v1102_v51  ;;  %v2783_v55 = vpop.f32.mrf.mxu0 }
 0x241   :  { %v1127_v57 = vsel %vm1098_vm10, %v2783_v55, -inf }
 0x242   :  { %v1114_v58 = vmax.f32 %v1112_v50, %v1113_v54  ;;  %v1104_v60 = vrot.slane %v1103_v37, 2  ;;  %v1128_v62 = vmax.f32 %v1126_v56, %v1127_v57  ;;  %v2789_v63 = vpop.f32.mrf.mxu0 }
 0x243   :  { %v1118_v4 = vsel %vm1098_vm10, %v2789_v63, -inf }
 0x244   :  { %v1115_v11 = vrot.slane %v1114_v58, 1  ;;  %v1105_v15 = vmax.f32 %v1103_v37, %v1104_v60  ;;  %v1129_v53 = vrot.slane %v1128_v62, 4  ;;  %v1119_v16 = vmax.f32 %v1117_v2, %v1118_v4  ;;  %v2795_v17 = vpop.f32.mrf.mxu0 }
 0x245   :  { %v1144_v47 = vsel %vm1098_vm10, %v2795_v17, -inf }
 0x246   :  { %v1116_v22 = vmax.f32 %v1114_v58, %v1115_v11  ;;  %v1106_v23 = vrot.slane %v1105_v15, 1  ;;  %v1130_v24 = vmax.f32 %v1128_v62, %v1129_v53  ;;  %v1120_v5 = vrot.slane %v1119_v16, 4  ;;  %v2798_v6 = vpop.f32.mrf.mxu0 }
 0x247   :  { %v1135_v56 = vsel %vm1098_vm10, %v2798_v6, -inf  ;;  %v1174_v53 = vrot.slane %v2756_v36, 3 }
 0x248   :  { %v2800_v28 = vmax.f32 %v1116_v22, %v1172_v21  ;;  %v1107_v30 = vmax.f32 %v1105_v15, %v1106_v23  ;;  %v1131_v33 = vrot.slane %v1130_v24, 2  ;;  %v1121_v19 = vmax.f32 %v1119_v16, %v1120_v5  ;;  %v2802_v25 = vpop.f32.mrf.mxu0 }
 0x249   :  { %v1145_v40 = vsel %vm1098_vm10, %v2802_v25, -inf  ;;  %v1176_v5 = vrot.slane %v2756_v36, 5 }
 0x24a   :  { %v1228_v41 = vrot.slane %v2800_v28, %v2687_v61  ;;  %v2809_v44 = vmax.f32 %v1107_v30, %v2756_v36  ;;  %v1132_v46 = vmax.f32 %v1130_v24, %v1131_v33  ;;  %v2813_v35 = vpop.f32.mrf.mxu0  ;;  %v1122_v48 = vrot.slane %v1121_v19, 2 }
 0x24b   :  { %v1146_v50 = vmax.f32 %v1144_v47, %v1145_v40  ;;  %v1136_v51 = vsel %vm1098_vm10, %v2813_v35, -inf  ;;  %v1173_v24 = vrot.slane %v2756_v36, 2 }
 0x24c   :  { %v1255_v54 = vsub.f32 %v2064_v32, %v1228_v41  ;;  %v1224_v37 = vrot.slane %v2809_v44, %v2687_v61  ;;  %v2821_v57 = vpop.f32.mrf.mxu0  ;;  %v1133_v58 = vrot.slane %v1132_v46, 1  ;;  %v1123_v60 = vmax.f32 %v1121_v19, %v1122_v48 }
 0x24d   :  { %v1147_v62 = vrot.slane %v1146_v50, 4  ;;  %v1137_v2 = vmax.f32 %v1135_v56, %v1136_v51  ;;  %v1256_v4 = vsub.f32 %v2768_v34, %v1228_v41 }
 0x24e   :  { %v1273_v11 = vmul.f32 1.442695, %v1255_v54  ;;  %v1253_v15 = vsub.f32 %v2766_v39, %v1224_v37  ;;  %v2826_v32 = vpop.f32.mrf.mxu0  ;;  %v1134_v16 = vmax.f32 %v1132_v46, %v1133_v58  ;;  %v1124_v21 = vrot.slane %v1123_v60, 1 }
 0x24f   :  { %v1148_v22 = vmax.f32 %v1146_v50, %v1147_v62  ;;  %v1138_v23 = vrot.slane %v1137_v2, 4  ;;  %v1254_v33 = vsub.f32 %v2773_v45, %v1224_v37  ;;  %v1275_v40 = vmul.f32 1.442695, %v1256_v4 }
 0x250   :  { %v2830_v30 = vpop.f32.mrf.mxu0  ;;  %v2833_v34 = vmax.f32 %v1134_v16, %v1174_v53  ;;  %v1125_v19 = vmax.f32 %v1123_v60, %v1124_v21  ;;  %2136 = vpow2.f32 %v1273_v11  ;;  %v1269_v48 = vmul.f32 1.442695, %v1253_v15 }
 0x251   :  { %v1149_v39 = vrot.slane %v1148_v22, 2  ;;  %v1139_v41 = vmax.f32 %v1137_v2, %v1138_v23  ;;  %v1163_v46 = vsel %vm1098_vm10, %v2830_v30, -inf  ;;  %v1162_v45 = vsel %vm1098_vm10, %v2821_v57, -inf }
 0x252   :  { %v2837_v47 = vpop.f32.mrf.mxu0  ;;  %v1236_v50 = vrot.slane %v2833_v34, %v2687_v61  ;;  %v2841_v51 = vmax.f32 %v1125_v19, %v1173_v24  ;;  %v1164_v56 = vmax.f32 %v1162_v45, %v1163_v46  ;;  %v1271_v60 = vmul.f32 1.442695, %v1254_v33 }
 0x253   :  { %v1150_v54 = vmax.f32 %v1148_v22, %v1149_v39  ;;  %v1140_v37 = vrot.slane %v1139_v41, 2  ;;  %v1154_v58 = vsel %vm1098_vm10, %v2837_v47, -inf  ;;  %v1153_v4 = vsel %vm1098_vm10, %v2826_v32, -inf }
 0x254   :  { %v1259_v62 = vsub.f32 %v2779_v49, %v1236_v50  ;;  %v1232_v2 = vrot.slane %v2841_v51, %v2687_v61  ;;  %v1165_v53 = vrot.slane %v1164_v56, 4  ;;  %v1155_v16 = vmax.f32 %v1153_v4, %v1154_v58 }
 0x255   :  { %v1151_v11 = vrot.slane %v1150_v54, 1  ;;  %v1141_v15 = vmax.f32 %v1139_v41, %v1140_v37  ;;  %2138 = vpow2.f32 %v1275_v40  ;;  %v1260_v21 = vsub.f32 %v2783_v55, %v1236_v50 }
 0x256   :  { %v1257_v22 = vsub.f32 %v2781_v52, %v1232_v2  ;;  %v1175_v23 = vrot.slane %v2756_v36, 4  ;;  %2140 = vpow2.f32 %v1269_v48  ;;  %v1258_v49 = vsub.f32 %v2789_v63, %v1232_v2 }
 0x257   :  { %v1152_v24 = vmax.f32 %v1150_v54, %v1151_v11  ;;  %v1142_v33 = vrot.slane %v1141_v15, 1  ;;  %2142 = vpow2.f32 %v1271_v60  ;;  %v1166_v39 = vmax.f32 %v1164_v56, %v1165_v53 }
 0x258   :  { %v1277_v19 = vmul.f32 1.442695, %v1257_v22  ;;  %v1156_v46 = vrot.slane %v1155_v16, 4  ;;  %v1281_v45 = vmul.f32 1.442695, %v1259_v62 }
 0x259   :  { %v1279_v41 = vmul.f32 1.442695, %v1258_v49  ;;  %v2856_v37 = vmax.f32 %v1152_v24, %v1176_v5  ;;  %v1143_v40 = vmax.f32 %v1141_v15, %v1142_v33  ;;  %v1283_v58 = vmul.f32 1.442695, %v1260_v21 }
 0x25a   :  { %2144 = vpow2.f32 %v1277_v19  ;;  %v1167_v55 = vrot.slane %v1166_v39, 2  ;;  %v1157_v52 = vmax.f32 %v1155_v16, %v1156_v46 }
 0x25b   :  { %2146 = vpow2.f32 %v1279_v41  ;;  %v1244_v48 = vrot.slane %v2856_v37, %v2687_v61  ;;  %v2860_v63 = vmax.f32 %v1143_v40, %v1175_v23  ;;  %v1205_v41 = vrot.slane %v2841_v51, 6 }
 0x25c   :  { %v1168_v50 = vmax.f32 %v1166_v39, %v1167_v55  ;;  %v1158_v54 = vrot.slane %v1157_v52, 2  ;;  %2148 = vpow2.f32 %v1281_v45  ;;  %v1203_v45 = vrot.slane %v2800_v28, 7 }
 0x25d   :  { %v1263_v56 = vsub.f32 %v2795_v17, %v1244_v48  ;;  %v1264_v60 = vsub.f32 %v2802_v25, %v1244_v48  ;;  %v2864_v5 = vpop.eup %2136  ;;  %2150 = vpow2.f32 %v1283_v58  ;;  %v1240_v62 = vrot.slane %v2860_v63, %v2687_v61 }
 0x25e   :  { %v1169_v2 = vrot.slane %v1168_v50, 1  ;;  %v1159_v4 = vmax.f32 %v1157_v52, %v1158_v54  ;;  %v1178_v17 = vrot.slane %v2756_v36, 7 }
 0x25f   :  { %v1289_v11 = vmul.f32 1.442695, %v1263_v56  ;;  %v1291_v15 = vmul.f32 1.442695, %v1264_v60  ;;  %v1261_v53 = vsub.f32 %v2798_v6, %v1240_v62  ;;  %v1262_v16 = vsub.f32 %v2813_v35, %v1240_v62 }
 0x260   :  { %v1170_v21 = vmax.f32 %v1168_v50, %v1169_v2  ;;  %v1160_v23 = vrot.slane %v1159_v4, 1  ;;  %v1177_v6 = vrot.slane %v2756_v36, 6  ;;  %v1310_v56 = vsel %vm1098_vm10, %v2864_v5, 0.0 }
 0x261   :  { %2152 = vpow2.f32 %v1289_v11  ;;  %v1285_v25 = vmul.f32 1.442695, %v1261_v53  ;;  %v1287_v22 = vmul.f32 1.442695, %v1262_v16 }
 0x262   :  { %2154 = vpow2.f32 %v1291_v15  ;;  %v2871_v49 = vpop.eup %2138  ;;  %v2873_v24 = vmax.f32 %v1170_v21, %v1178_v17  ;;  %v1161_v19 = vmax.f32 %v1159_v4, %v1160_v23  ;;  %v1209_v21 = vrot.slane %v2860_v63, 4 }
 0x263   :  { %v2875_v33 = vpop.eup %2140  ;;  %2156 = vpow2.f32 %v1285_v25  ;;  %v1311_v60 = vsel %vm1098_vm10, %v2871_v49, 0.0 }
 0x264   :  { %v2877_v39 = vpop.eup %2142  ;;  %2158 = vpow2.f32 %v1287_v22  ;;  %v1252_v35 = vrot.slane %v2873_v24, %v2687_v61  ;;  %v1193_v40 = vmax.f32 %v1161_v19, %v1177_v6  ;;  %v1301_v55 = vsel %vm1098_vm10, %v2875_v33, 0.0 }
 0x265   :  { %v1302_v52 = vsel %vm1098_vm10, %v2877_v39, 0.0  ;;  %v1312_v16 = vadd.f32 %v1311_v60, %v1310_v56  ;;  %v1207_v22 = vrot.slane %v2833_v34, 5 }
 0x266   :  { %v1267_v48 = vsub.f32 %v2821_v57, %v1252_v35  ;;  %v1268_v50 = vsub.f32 %v2830_v30, %v1252_v35  ;;  %v1204_v57 = vsel %vm354_vm2, %v1203_v45, %v2809_v44  ;;  %v1303_v30 = vadd.f32 %v1302_v52, %v1301_v55 }
 0x267   :  { %v2882_v46 = vpop.eup %2144  ;;  %v1248_v11 = vrot.slane %v1193_v40, %v2687_v61  ;;  %v1206_v15 = vsel %vm357_vm3, %v1205_v41, %v1204_v57  ;;  %v1211_v41 = vrot.slane %v2856_v37, 3  ;;  %v1313_v34 = vrot.slane %v1312_v16, 4 }
 0x268   :  { %v2886_v58 = vpop.eup %2146  ;;  %v1319_v54 = vsel %vm1098_vm10, %v2882_v46, 0.0  ;;  %v1297_v62 = vmul.f32 1.442695, %v1267_v48  ;;  %v1299_v2 = vmul.f32 1.442695, %v1268_v50  ;;  %v1304_v35 = vrot.slane %v1303_v30, 4 }
 0x269   :  { %v1320_v28 = vsel %vm1098_vm10, %v2886_v58, 0.0  ;;  %v2898_v51 = vpop.eup %2148  ;;  %v1265_v17 = vsub.f32 %v2826_v32, %v1248_v11  ;;  %v1266_v19 = vsub.f32 %v2837_v47, %v1248_v11  ;;  %v1208_v32 = vsel %vm360_vm4, %v1207_v22, %v1206_v15 }
 0x26a   :  { %v2904_v4 = vpop.eup %2150  ;;  %v1321_v53 = vadd.f32 %v1320_v28, %v1319_v54  ;;  %2160 = vpow2.f32 %v1297_v62  ;;  %v1328_v44 = vsel %vm1098_vm10, %v2898_v51, 0.0  ;;  %v1210_v50 = vsel %vm363_vm5, %v1209_v21, %v1208_v32 }
 0x26b   :  { %2162 = vpow2.f32 %v1299_v2  ;;  %v1329_v23 = vsel %vm1098_vm10, %v2904_v4, 0.0  ;;  %v1293_v45 = vmul.f32 1.442695, %v1265_v17  ;;  %v1295_v55 = vmul.f32 1.442695, %v1266_v19 }
 0x26c   :  { %v1322_v63 = vrot.slane %v1321_v53, 4  ;;  %v1330_v48 = vadd.f32 %v1329_v23, %v1328_v44  ;;  %v1213_v54 = vrot.slane %v1193_v40, 2  ;;  %v1305_v60 = vadd.f32 %v1304_v35, %v1303_v30 }
 0x26d   :  { %2164 = vpow2.f32 %v1293_v45  ;;  %v1212_v40 = vsel %vm366_vm6, %v1211_v41, %v1210_v50  ;;  %v1314_v11 = vadd.f32 %v1313_v34, %v1312_v16  ;;  %v1215_v44 = vrot.slane %v2873_v24, 1 }
 0x26e   :  { %v2912_v25 = vpop.eup %2152  ;;  %2166 = vpow2.f32 %v1295_v55  ;;  %v1323_v2 = vadd.f32 %v1322_v63, %v1321_v53  ;;  %v1331_v15 = vrot.slane %v1330_v48, 4  ;;  %v1214_v17 = vsel %vm369_vm7, %v1213_v54, %v1212_v40 }
 0x26f   :  { %v2920_v6 = vpop.eup %2154  ;;  %v1346_v47 = vsel %vm1098_vm10, %v2912_v25, 0.0  ;;  %v1306_v23 = vrot.slane %v1305_v60, 2  ;;  %v1216_v30 = vsel %vm372_vm8, %v1215_v44, %v1214_v17  ;;  %v1315_v32 = vrot.slane %v1314_v11, 2 }
 0x270   :  { %v2924_v52 = vpop.eup %2156  ;;  %v1347_v56 = vsel %vm1098_vm10, %v2920_v6, 0.0  ;;  %v1324_v19 = vrot.slane %v1323_v2, 2  ;;  %v1332_v53 = vadd.f32 %v1331_v15, %v1330_v48  ;;  %v1218_v24 = vsub.f32 %v2756_v36, %v1216_v30 }
 0x271   :  { %v2927_v28 = vpop.eup %2158  ;;  %v1337_v37 = vsel %vm1098_vm10, %v2924_v52, 0.0  ;;  %v1348_v21 = vadd.f32 %v1347_v56, %v1346_v47  ;;  %v1307_v41 = vadd.f32 %v1306_v23, %v1305_v60  ;;  %v1316_v56 = vadd.f32 %v1315_v32, %v1314_v11 }
 0x272   :  { %v1338_v62 = vsel %vm1098_vm10, %v2927_v28, 0.0  ;;  %v1325_v50 = vadd.f32 %v1324_v19, %v1323_v2  ;;  %v1219_v15 = vmul.f32 1.442695, %v1218_v24 }
 0x273   :  { %v1339_v57 = vadd.f32 %v1338_v62, %v1337_v37  ;;  %v1349_v63 = vrot.slane %v1348_v21, 4  ;;  %v1333_v37 = vrot.slane %v1332_v53, 2  ;;  %v1308_v40 = vrot.slane %v1307_v41, 1 }
 0x274   :  { %v1317_v36 = vrot.slane %v1316_v56, 1  ;;  %2168 = vpow2.f32 %v1219_v15 }
 0x275   :  { %v1340_v22 = vrot.slane %v1339_v57, 4  ;;  %v1350_v62 = vadd.f32 %v1349_v63, %v1348_v21  ;;  %v1334_v2 = vadd.f32 %v1333_v37, %v1332_v53  ;;  %v1309_v30 = vadd.f32 %v1308_v40, %v1307_v41 }
 0x276   :  { %v1318_v24 = vadd.f32 %v1317_v36, %v1316_v56 }
 0x277   :  { %v1341_v45 = vadd.f32 %v1340_v22, %v1339_v57  ;;  %v2941_v35 = vpop.eup %2160  ;;  %v1326_v22 = vrot.slane %v1325_v50, 1  ;;  %v1351_v19 = vrot.slane %v1350_v62, 2  ;;  %v1335_v0 = vrot.slane %v1334_v2, 1 }
 0x278   :  { %v2943_v55 = vpop.eup %2162  ;;  %v1364_v16 = vsel %vm1098_vm10, %v2941_v35, 0.0 }
 0x279   :  { %v1365_v34 = vsel %vm1098_vm10, %v2943_v55, 0.0  ;;  %v1342_v54 = vrot.slane %v1341_v45, 2  ;;  %v1327_v63 = vadd.f32 %v1326_v22, %v1325_v50  ;;  %v1336_v27 = vadd.f32 %v1335_v0, %v1334_v2 }
 0x27a   :  { %v1366_v47 = vadd.f32 %v1365_v34, %v1364_v16  ;;  %v2950_v48 = vpop.eup %2164 }
 0x27b   :  { %v2952_v17 = vpop.eup %2166  ;;  %v1343_v60 = vadd.f32 %v1342_v54, %v1341_v45  ;;  %v1355_v23 = vsel %vm1098_vm10, %v2950_v48, 0.0  ;;  %v1352_v45 = vadd.f32 %v1351_v19, %v1350_v62 }
 0x27c   :  { %v1367_v57 = vrot.slane %v1366_v47, 4  ;;  %v1356_v11 = vsel %vm1098_vm10, %v2952_v17, 0.0 }
 0x27d   :  { %v1357_v21 = vadd.f32 %v1356_v11, %v1355_v23  ;;  %v1344_v16 = vrot.slane %v1343_v60, 1  ;;  %v1353_v26 = vrot.slane %v1352_v45, 1 }
 0x27e   :  { %v1368_v44 = vadd.f32 %v1367_v57, %v1366_v47  ;;  %v1381_v47 = vsel %vm354_vm2, %v1318_v24, %v1309_v30 }
 0x27f   :  { %v1358_v34 = vrot.slane %v1357_v21, 4  ;;  %v1382_v53 = vsel %vm357_vm3, %v1327_v63, %v1381_v47  ;;  %v1345_v37 = vadd.f32 %v1344_v16, %v1343_v60  ;;  %v1354_v56 = vadd.f32 %v1353_v26, %v1352_v45 }
 0x280   :  { %v1369_v32 = vrot.slane %v1368_v44, 2  ;;  %v1383_v41 = vsel %vm360_vm4, %v1336_v27, %v1382_v53 }
 0x281   :  { %v1359_v54 = vadd.f32 %v1358_v34, %v1357_v21  ;;  %v1384_v40 = vsel %vm363_vm5, %v1345_v37, %v1383_v41  ;;  %v2169_v19 = vpop.eup %2168 }
 0x282   :  { %v1370_v57 = vadd.f32 %v1369_v32, %v1368_v44  ;;  %v1385_v36 = vsel %vm366_vm6, %v1354_v56, %v1384_v40 }
 0x283   :  { %v1360_v59 = vrot.slane %v1359_v54, 2 }
 0x284   :  { %v1371_v50 = vrot.slane %v1370_v57, 1 }
 0x285   :  { %v1361_v23 = vadd.f32 %v1360_v59, %v1359_v54 }
 0x286   :  { %v1372_v62 = vadd.f32 %v1371_v50, %v1370_v57 }
 0x287   :  { %v1362_v15 = vrot.slane %v1361_v23, 1 }
 0x289   :  { %v1363_v22 = vadd.f32 %v1362_v15, %v1361_v23 }
 0x28b   :  { %v1386_v44 = vsel %vm369_vm7, %v1363_v22, %v1385_v36 }
 0x28c   :  { %v1387_v60 = vsel %vm372_vm8, %v1372_v62, %v1386_v44 }
 0x28d   :  { %v1389_v11 = vadd.f32 %v2169_v19, %v1387_v60 }
 0x28f   :  { %2170 = vrcp.f32 %v1389_v11 }
 0x29c   :  { %v2171_v0 = vpop.eup %2170 }
 0x29d   :  { %v1392_v59 = vmul.f32 %v2171_v0, %v2169_v19  ;;  %v1449_v27 = vrot.slane %v2171_v0, %v2676_v43  ;;  %v1442_v2 = vcombine.high %v2171_v0, %v2171_v0 }
 0x29f   :  { %v1393_v21 = vpack.c.bf16 %v1392_v59, %v1392_v59  ;;  %v1457_v30 = vcombine.high %v1449_v27, %v1449_v27  ;;  %v1465_v26 = vrot.slane %v1449_v27, %v2676_v43  ;;  %v1456_v32 = vrot.slane %v1442_v2, %v2676_v43 }
 0x2a1   :  { %2081 = vmatmul.mubr.msk.bf16.vlgmr.msra.gmra.mxu1 %vm1098_vm10, %v1393_v21  ;;  %v1494_v63 = vrot.slane %v1465_v26, %v2687_v61  ;;  %v1479_v16 = vrot.slane %v1457_v30, %v2676_v43  ;;  %v1487_v34 = vcombine.high %v1465_v26, %v1465_v26  ;;  %v1472_v24 = vrot.slane %v1456_v32, %v2676_v43  ;;  %v3014_v30 = vld [vmem:[#allocation14] ss:$0 sm:$0xff] }
 0x2a2   :  { %2085 = vmatpush3.bf16.msra.mxu1 %v2747_v12  ;;  %v1458_v45 = vcombine.high %v1456_v32, %v1456_v32  ;;  %v752_v32 = vadd.f32 %v2726_v29, %v3014_v30 }
 0x2a3   :  { %v1531_v54 = vmul.f32 %v2875_v33, %v1494_v63  ;;  %v1532_v47 = vmul.f32 %v2877_v39, %v1494_v63  ;;  %v1498_v57 = vrot.slane %v1479_v16, %v2687_v61  ;;  %v1502_v53 = vrot.slane %v1487_v34, %v2687_v61 }
 0x2a4   :  { %v1489_v37 = vcombine.high %v1479_v16, %v1479_v16  ;;  %v1510_v23 = vrot.slane %v1472_v24, %v2687_v61  ;;  %v1486_v41 = vrot.slane %v1458_v45, %v2676_v43  ;;  %v1488_v50 = vcombine.high %v1472_v24, %v1472_v24 }
 0x2a5   :  { %v1547_v40 = vpack.c.bf16 %v1532_v47, %v1531_v54  ;;  %v1533_v15 = vmul.f32 %v2864_v5, %v1498_v57  ;;  %v1534_v12 = vmul.f32 %v2871_v49, %v1498_v57  ;;  %v1535_v56 = vmul.f32 %v2882_v46, %v1502_v53 }
 0x2a6   :  { %v1536_v33 = vmul.f32 %v2886_v58, %v1502_v53  ;;  %v1506_v39 = vrot.slane %v1489_v37, %v2687_v61  ;;  %v1539_v22 = vmul.f32 %v2924_v52, %v1510_v23  ;;  %v1540_v62 = vmul.f32 %v2927_v28, %v1510_v23 }
 0x2a7   :  { %2086 = vmatprep.mubr.msk.bf16.mxu1 %vm1098_vm10, %v1547_v40  ;;  %v1548_v36 = vpack.c.bf16 %v1534_v12, %v1533_v15  ;;  %v1514_v43 = vrot.slane %v1486_v41, %v2687_v61  ;;  %v1518_v44 = vrot.slane %v1488_v50, %v2687_v61  ;;  %v1490_v5 = vcombine.high %v1486_v41, %v1486_v41 }
 0x2a8   :  { %v1549_v19 = vpack.c.bf16 %v1536_v33, %v1535_v56  ;;  %v1537_v49 = vmul.f32 %v2898_v51, %v1506_v39  ;;  %v1538_v46 = vmul.f32 %v2904_v4, %v1506_v39  ;;  %v1551_v58 = vpack.c.bf16 %v1540_v62, %v1539_v22 }
 0x2a9   :  { %2087 = vmatmul.mubr.msk.bf16.vlgmr.msra.gmra.mxu1 %vm1098_vm10, %v1548_v36  ;;  %v1541_v52 = vmul.f32 %v2912_v25, %v1514_v43  ;;  %v1542_v28 = vmul.f32 %v2920_v6, %v1514_v43  ;;  %v1543_v60 = vmul.f32 %v2950_v48, %v1518_v44  ;;  %v1544_v11 = vmul.f32 %v2952_v17, %v1518_v44  ;;  %v2135_v6 = vld [vmem:[%s3088_s9] sm:$0xff]  }
 0x2aa   :  { %2090 = vmatprep.mubr.msk.bf16.mxu1 %vm1098_vm10, %v1549_v19  ;;  %v1550_v0 = vpack.c.bf16 %v1538_v46, %v1537_v49  ;;  %v1522_v59 = vrot.slane %v1490_v5, %v2687_v61  ;;  %v2134_v61 = vld [vmem:[%s3088_s9 + $0x8] sm:$0xff]   ;;  %v3097_v25 = vmov 0.0   ;;  %v744_v16 = vadd.f32 %v3014_v30, %v2728_v7  ;;  %s2398_s9 = smov [#allocation17]  }
 0x2ab   :  { %v1552_v27 = vpack.c.bf16 %v1542_v28, %v1541_v52  ;;  %v1553_v51 = vpack.c.bf16 %v1544_v11, %v1543_v60  ;;  %2103 = vmatpush3.bf16.msra.mxu0 %v2134_v61  ;;  %v755_v34 = vadd.f32 %v2730_v1, %v3014_v30  ;;  %v747_v54 = vadd.f32 %v3014_v30, %v2732_v42  ;;  %s1856_s24 = sshll.u32 %s2398_s9, 4  ;;  %s1857_s24 = int_to_ptr.vmem [resolvable:$true] %s1856_s24 }
 0x2ac   :  { %v1545_v4 = vmul.f32 %v2941_v35, %v1522_v59  ;;  %v1546_v2 = vmul.f32 %v2943_v55, %v1522_v59  ;;  %2104 = vmatprep.subr.bf16.mxu0 %v3097_v25  ;;  %v768_v7 = vadd.f32 %v2734_v8, %v3014_v30  ;;  %v760_v56 = vadd.f32 %v3014_v30, %v2736_v9  ;;  %s2352_s0 = scalar_lea.vmem %s1857_s24, 128  ;;  %p2357_p4 = scmp.lt.s32.totalorder %s1857_s24, %s1857_s24 }
 0x2ad   :  { %v771_v33 = vadd.f32 %v2738_v10, %v3014_v30  ;;  %v763_v8 = vadd.f32 %v3014_v30, %v2740_v3  ;;  %v784_v11 = vadd.f32 %v2745_v31, %v3014_v30  ;;  %v787_v61 = vadd.f32 %v2752_v14, %v3014_v30  ;;  %p2353_p3 = scmp.ne.s32.totalorder %s1857_s24, %s2352_s0  ;;  %p2358_p5 = scmp.lt.s32.totalorder %s2352_s0, %s2352_s0 }
 0x2ae   :  { %v1554_v21 = vpack.c.bf16 %v1546_v2, %v1545_v4 }
 0x2af   :  { %2105 = vmatpush3.bf16.msra.mxu0 %v2135_v6  ;;  %p2359_p6 = por %p2358_p5, %p2357_p4 }
 0x2b1   :  { %2091 = vmatmul.mubr.msk.bf16.gmra.mxu1 %vm1098_vm10, %v1550_v0  ;;  %p2360_p7 = pnand %p2359_p6, %p2353_p3 }
 0x2b2   :  { %2094 = vmatprep.mubr.msk.bf16.mxu1 %vm1098_vm10, %v1551_v58 }
 0x2b9   :  { %2095 = vmatmul.mubr.msk.bf16.gmra.mxu1 %vm1098_vm10, %v1552_v27 }
 0x2ba   :  { %2098 = vmatprep.mubr.msk.bf16.mxu1 %vm1098_vm10, %v1553_v51 }
 0x2c1   :  { %2099 = vmatmul.mubr.msk.bf16.gmra.mxu1 %vm1098_vm10, %v1554_v21  ;;  %v776_v21 = vadd.f32 %v3014_v30, %v2750_v13 }
 0x361   :  { %v3012_v35 = vpop.f32.mrf.mxu1 }
 0x363   :  { %v2082_v55 = vpop.f32.mrf.mxu1 }
 0x365   :  { %v1438_v48 = vpop.f32.mrf.mxu1 }
 0x367   :  { %v2083_v17 = vpop.f32.mrf.mxu1 }
 0x368   :  { %v779_v17 = vadd.f32 %v3014_v30, %v2754_v18  ;;  %v800_v18 = vadd.f32 %v2758_v38, %v3014_v30 }
 0x369   :  { %v2088_v26 = vpop.f32.mrf.mxu1 }
 0x36a   :  { %v1679_v24 = vmul.f32 %v2088_v26, %v752_v32 }
 0x36b   :  { %v1613_v63 = vpop.f32.mrf.mxu1 }
 0x36c   :  { %v1677_v47 = vmul.f32 %v1613_v63, %v744_v16  ;;  %v1702_v37 = vsel %vm207_vm1, %v1679_v24, 0.0 }
 0x36d   :  { %v2089_v45 = vpop.f32.mrf.mxu1 }
 0x36e   :  { %v1680_v57 = vmul.f32 %v2089_v45, %v755_v34  ;;  %v1693_v1 = vsel %vm207_vm1, %v1677_v47, 0.0 }
 0x36f   :  { %v1616_v53 = vpop.f32.mrf.mxu1 }
 0x370   :  { %v1703_v23 = vsel %vm207_vm1, %v1680_v57, 0.0  ;;  %v1678_v29 = vmul.f32 %v1616_v53, %v747_v54 }
 0x371   :  { %v1704_v41 = vadd.f32 %v1703_v23, %v1702_v37  ;;  %v2092_v50 = vpop.f32.mrf.mxu1 }
 0x372   :  { %v1694_v40 = vsel %vm207_vm1, %v1678_v29, 0.0  ;;  %v1683_v39 = vmul.f32 %v2092_v50, %v768_v7 }
 0x373   :  { %v1705_v15 = vrot.slane %v1704_v41, 4  ;;  %v1695_v12 = vadd.f32 %v1694_v40, %v1693_v1  ;;  %v1629_v42 = vpop.f32.mrf.mxu1 }
 0x374   :  { %v1681_v43 = vmul.f32 %v1629_v42, %v760_v56  ;;  %v1720_v46 = vsel %vm207_vm1, %v1683_v39, 0.0 }
 0x375   :  { %v1706_v22 = vadd.f32 %v1705_v15, %v1704_v41  ;;  %v1696_v62 = vrot.slane %v1695_v12, 4  ;;  %v2093_v36 = vpop.f32.mrf.mxu1  ;;  %v792_v15 = vadd.f32 %v3014_v30, %v2760_v20 }
 0x376   :  { %v1684_v44 = vmul.f32 %v2093_v36, %v771_v33  ;;  %v1711_v0 = vsel %vm207_vm1, %v1681_v43, 0.0  ;;  %v3099_v36 = vld [vmem:[#allocation26_spill] sm:$0xff] }
 0x377   :  { %v1707_v5 = vrot.slane %v1706_v22, 2  ;;  %v1697_v19 = vadd.f32 %v1696_v62, %v1695_v12  ;;  %v1632_v49 = vpop.f32.mrf.mxu1  ;;  %v3098_v12 = vld [vmem:[#allocation25_spill] sm:$0xff] }
 0x378   :  { %v1721_v58 = vsel %vm207_vm1, %v1684_v44, 0.0  ;;  %v1682_v9 = vmul.f32 %v1632_v49, %v763_v8  ;;  %v803_v42 = vadd.f32 %v3098_v12, %v3014_v30  ;;  %v795_v8 = vadd.f32 %v3014_v30, %v3099_v36 }
 0x379   :  { %v1708_v52 = vadd.f32 %v1707_v5, %v1706_v22  ;;  %v1698_v28 = vrot.slane %v1697_v19, 2  ;;  %v1722_v10 = vadd.f32 %v1721_v58, %v1720_v46  ;;  %v2096_v60 = vpop.f32.mrf.mxu1 }
 0x37a   :  { %v1712_v3 = vsel %vm207_vm1, %v1682_v9, 0.0  ;;  %v1687_v25 = vmul.f32 %v2096_v60, %v784_v11 }
 0x37b   :  { %v1709_v59 = vrot.slane %v1708_v52, 1  ;;  %v1699_v27 = vadd.f32 %v1698_v28, %v1697_v19  ;;  %v1723_v51 = vrot.slane %v1722_v10, 4  ;;  %v1713_v4 = vadd.f32 %v1712_v3, %v1711_v0  ;;  %v1645_v2 = vpop.f32.mrf.mxu1 }
 0x37c   :  { %v1685_v26 = vmul.f32 %v1645_v2, %v776_v21  ;;  %v1738_v13 = vsel %vm207_vm1, %v1687_v25, 0.0 }
 0x37d   :  { %v1700_v6 = vrot.slane %v1699_v27, 1  ;;  %v1724_v55 = vadd.f32 %v1723_v51, %v1722_v10  ;;  %v1714_v48 = vrot.slane %v1713_v4, 4  ;;  %v2097_v31 = vpop.f32.mrf.mxu1  ;;  %v1710_v63 = vadd.f32 %v1709_v59, %v1708_v52 }
 0x37e   :  { %v1688_v32 = vmul.f32 %v2097_v31, %v787_v61  ;;  %v1729_v29 = vsel %vm207_vm1, %v1685_v26, 0.0 }
 0x37f   :  { %v1701_v16 = vadd.f32 %v1700_v6, %v1699_v27  ;;  %v1725_v34 = vrot.slane %v1724_v55, 2  ;;  %v1715_v24 = vadd.f32 %v1714_v48, %v1713_v4  ;;  %v1648_v45 = vpop.f32.mrf.mxu1 }
 0x380   :  { %v1739_v54 = vsel %vm207_vm1, %v1688_v32, 0.0  ;;  %v1686_v14 = vmul.f32 %v1648_v45, %v779_v17  ;;  %v3100_v45 = vld [vmem:[#allocation24_spill] sm:$0xff] }
 0x381   :  { %v1773_v47 = vsel %vm354_vm2, %v1710_v63, %v1701_v16  ;;  %v1726_v57 = vadd.f32 %v1725_v34, %v1724_v55  ;;  %v1716_v53 = vrot.slane %v1715_v24, 2  ;;  %v1740_v37 = vadd.f32 %v1739_v54, %v1738_v13  ;;  %v2100_v23 = vpop.f32.mrf.mxu1 }
 0x382   :  { %v1730_v41 = vsel %vm207_vm1, %v1686_v14, 0.0  ;;  %v1691_v33 = vmul.f32 %v2100_v23, %v800_v18  ;;  %v543_v13 = vadd.f32 %v3014_v30, %v3100_v45  ;;  %v1926_v18 = vld [vmem:[#allocation16] ss:$0 sm:$0xff] }
 0x383   :  { %v1717_v50 = vadd.f32 %v1716_v53, %v1715_v24  ;;  %v1741_v7 = vrot.slane %v1740_v37, 4  ;;  %v1731_v1 = vadd.f32 %v1730_v41, %v1729_v29  ;;  %v1661_v40 = vpop.f32.mrf.mxu1  ;;  %v1727_v56 = vrot.slane %v1726_v57, 1 }
 0x384   :  { %v1689_v43 = vmul.f32 %v1661_v40, %v792_v15  ;;  %v1756_v20 = vsel %vm207_vm1, %v1691_v33, 0.0 }
 0x385   :  { %v1718_v39 = vrot.slane %v1717_v50, 1  ;;  %v1742_v22 = vadd.f32 %v1741_v7, %v1740_v37  ;;  %v1732_v62 = vrot.slane %v1731_v1, 4  ;;  %v2101_v38 = vpop.f32.mrf.mxu1  ;;  %v1728_v58 = vadd.f32 %v1727_v56, %v1726_v57 }
 0x386   :  { %v1692_v44 = vmul.f32 %v2101_v38, %v803_v42  ;;  %v1747_v3 = vsel %vm207_vm1, %v1689_v43, 0.0 }
 0x387   :  { %v1719_v5 = vadd.f32 %v1718_v39, %v1717_v50  ;;  %v1743_v19 = vrot.slane %v1742_v22, 2  ;;  %v1733_v49 = vadd.f32 %v1732_v62, %v1731_v1  ;;  %v1664_v46 = vpop.f32.mrf.mxu1 }
 0x388   :  { %v1757_v9 = vsel %vm207_vm1, %v1692_v44, 0.0  ;;  %v1690_v52 = vmul.f32 %v1664_v46, %v795_v8 }
 0x389   :  { %v1774_v28 = vsel %vm357_vm3, %v1719_v5, %v1773_v47  ;;  %v1744_v10 = vadd.f32 %v1743_v19, %v1742_v22  ;;  %v1734_v60 = vrot.slane %v1733_v49, 2  ;;  %v1758_v11 = vadd.f32 %v1757_v9, %v1756_v20 }
 0x38a   :  { %v1775_v0 = vsel %vm360_vm4, %v1728_v58, %v1774_v28  ;;  %v1748_v59 = vsel %vm207_vm1, %v1690_v52, 0.0  ;;  %v1676_v47 = vmul.f32 %v3012_v35, %v543_v13 }
 0x38b   :  { %v1735_v27 = vadd.f32 %v1734_v60, %v1733_v49  ;;  %v1759_v51 = vrot.slane %v1758_v11, 4  ;;  %v1749_v4 = vadd.f32 %v1748_v59, %v1747_v3  ;;  %v1745_v2 = vrot.slane %v1744_v10, 1 }
 0x38d   :  { %v1736_v21 = vrot.slane %v1735_v27, 1  ;;  %v1760_v61 = vadd.f32 %v1759_v51, %v1758_v11  ;;  %v1750_v25 = vrot.slane %v1749_v4, 4  ;;  %v1746_v31 = vadd.f32 %v1745_v2, %v1744_v10 }
 0x38f   :  { %v1737_v6 = vadd.f32 %v1736_v21, %v1735_v27  ;;  %v1761_v55 = vrot.slane %v1760_v61, 2  ;;  %v1751_v48 = vadd.f32 %v1750_v25, %v1749_v4 }
 0x391   :  { %v1776_v17 = vsel %vm363_vm5, %v1737_v6, %v1775_v0  ;;  %v1762_v26 = vadd.f32 %v1761_v55, %v1760_v61  ;;  %v1752_v32 = vrot.slane %v1751_v48, 2 }
 0x392   :  { %v1777_v63 = vsel %vm366_vm6, %v1746_v31, %v1776_v17 }
 0x393   :  { %v1753_v16 = vadd.f32 %v1752_v32, %v1751_v48  ;;  %v1763_v34 = vrot.slane %v1762_v26, 1 }
 0x395   :  { %v1754_v24 = vrot.slane %v1753_v16, 1  ;;  %v1764_v14 = vadd.f32 %v1763_v34, %v1762_v26 }
 0x397   :  { %v1755_v54 = vadd.f32 %v1754_v24, %v1753_v16 }
 0x399   :  { %v1778_v57 = vsel %vm369_vm7, %v1755_v54, %v1777_v63 }
 0x39a   :  { %v1779_v53 = vsel %vm372_vm8, %v1764_v14, %v1778_v57 }
 0x39b   :  { %v1781_v37 = vadd.f32 %v1779_v53, %v1676_v47 }
 0x39d   :  { %v1782_v23 = vpack.c.bf16 %v1781_v37, %v1781_v37 }
 0x39f   :  { %2107 = vmatmul.mubr.msk.bf16.vlgmr.msra.gmra.mxu0 %vm207_vm1, %v1782_v23 }
 0x45f   :  { %v1843_v29 = vpop.f32.mrf.mxu0 }
 0x460   :  { %v1844_v41 = vadd.f32 %v1926_v18, %v1843_v29 }
 0x461   :  { %v2108_v50 = vpop.f32.mrf.mxu0 }
 0x462   :  { %1849 = vst.msk [vmem:[#allocation17] sm:$0xff] %vm207_vm1, %v1844_v41 }
 0x463   :  { %v1846_v30 = vpop.f32.mrf.mxu0 }
 0x464   :  { %2363 = shalt.err (!%p2360_p7)
}
 0x465   :  { %1859 = dma.vmem_to_hbm [thread:$0]  %s1857_s24, 128, %s3092_s13, [#allocation4]   ;;  %v2109_v35 = vpop.f32.mrf.mxu0 }
 0x466   :  { %2382 = dma.done.wait [#allocation4], 128  }
 0x467   :  { %2383 = vsyncadd [#allocation4], 4294967168 }
 0x468   :  { %1863 = vsyncpa [#allocation3], 1 }
 0x469   :  { %1864 = vsyncpa [#allocation6], 1 }
 0x46a   :  { %1865 = vsyncpa [#allocation9], 1 }
 0x46b   :  { %1866 = vsyncpa [#allocation12], 1 }
 0x46c   :  { %1867 = vsyncpa [#allocation15], 1 }
 0x46d   :  { %1868 = vsyncpa [#allocation4], 1 }

</bundles_post_ra>
